<compile_context>
chip_gen: v7x
topology: tpu7x:2x2x1
jax: 0.10.0
libtpu: 0.0.40
codegen_flags: <defaults>
</compile_context>

<pallas_src>
import jax
import jax.numpy as jnp
from jax.experimental import pallas as pl
from jax.experimental.pallas import tpu as pltpu

IN_DIM = 785   # 784 flattened MNIST pixels + 1 timestep scalar
HID = 256
OUT_DIM = 784

LANE = 128
IN_PAD = 896   # next multiple of 128 >= 784 pixel features (7 * 128)
OUT_PAD = 896  # next multiple of 128 >= 784                 (7 * 128)


def _round_up(x, m):
    return (x + m - 1) // m * m


def _choose_batch_tile(B):
    """Pick a batch tile: <=1024 rows, >=2 grid steps when B permits (v7x
    megacore), multiple of 16 (bf16 sublane packing), balanced to minimize
    padded rows."""
    B16 = _round_up(max(B, 1), 16)
    if B16 <= 16:
        return 16
    num_tiles = max(2, -(-B16 // 1024))
    return _round_up(-(-B16 // num_tiles), 16)


def mlp_kernel(x_ref, t_ref, w1_ref, w1t_ref, b1_ref, w2_ref, b2_ref,
               w3_ref, b3_ref, w4_ref, b4_ref, o_ref):
    # Layer 1: Linear(896 -> 256) for the bf16 pixel block (f32 MXU accumulate),
    # plus an f32 rank-1 update for the raw timestep column, then bias + ReLU.
    h = jnp.dot(x_ref[...], w1_ref[...], preferred_element_type=jnp.float32)
    h = h + t_ref[...] * w1t_ref[...]          # (bt,1) * (1,256) f32 broadcast
    h = jnp.maximum(h + b1_ref[...], 0.0).astype(jnp.bfloat16)
    # Layer 2: Linear(256 -> 256) + ReLU
    h = jnp.dot(h, w2_ref[...], preferred_element_type=jnp.float32)
    h = jnp.maximum(h + b2_ref[...], 0.0).astype(jnp.bfloat16)
    # Layer 3: Linear(256 -> 256) + ReLU
    h = jnp.dot(h, w3_ref[...], preferred_element_type=jnp.float32)
    h = jnp.maximum(h + b3_ref[...], 0.0).astype(jnp.bfloat16)
    # Layer 4: Linear(256 -> 896), no activation; bf16 store (halves writeback).
    out = jnp.dot(h, w4_ref[...], preferred_element_type=jnp.float32) + b4_ref[...]
    o_ref[...] = out.astype(o_ref.dtype)


def prepare_params(params):
    """One-time padding / casting of the weights (avoids per-forward HBM round
    trips rebuilding padded weight buffers)."""
    w1, b1, w2, b2, w3, b3, w4, b4 = params
    w1_p = jnp.zeros((IN_PAD, HID), jnp.bfloat16).at[:OUT_DIM, :].set(
        w1[:OUT_DIM].astype(jnp.bfloat16))                       # pixel rows only
    w1t = w1[OUT_DIM:IN_DIM, :].astype(jnp.float32).reshape(1, HID)  # timestep row, f32
    w2_p = w2.astype(jnp.bfloat16)
    w3_p = w3.astype(jnp.bfloat16)
    w4_p = jnp.zeros((HID, OUT_PAD), jnp.bfloat16).at[:, :OUT_DIM].set(
        w4.astype(jnp.bfloat16))
    b1_p = b1.reshape(1, HID).astype(jnp.float32)
    b2_p = b2.reshape(1, HID).astype(jnp.float32)
    b3_p = b3.reshape(1, HID).astype(jnp.float32)
    b4_p = jnp.zeros((1, OUT_PAD), jnp.float32).at[:, :OUT_DIM].set(
        b4.reshape(1, OUT_DIM).astype(jnp.float32))
    return (w1_p, w1t, b1_p, w2_p, b2_p, w3_p, b3_p, w4_p, b4_p)


def simple_mnist_diffusion_forward(x, prepared, *, batch_tile=None,
                                   out_dtype=jnp.float32):
    """x: [B, 785] float32 -> [B, 784] (out_dtype, default float32)."""
    B = x.shape[0]
    assert x.shape[1] == IN_DIM
    w1_p, w1t, b1_p, w2_p, b2_p, w3_p, b3_p, w4_p, b4_p = prepared

    tile = batch_tile if batch_tile is not None else _choose_batch_tile(B)
    assert tile % 16 == 0, "batch_tile must be a multiple of 16 (bf16 sublanes)"
    B_pad = _round_up(max(B, 1), tile)
    grid = (B_pad // tile,)

    # Pixels: lane-dense bf16 pad (timestep column excluded -> stays zero).
    # TODO(synk): accept a pre-padded bf16 x from the producer to drop this pad.
    x_pix = jnp.zeros((B_pad, IN_PAD), jnp.bfloat16).at[:B, :OUT_DIM].set(
        x[:, :OUT_DIM].astype(jnp.bfloat16))
    # Raw timestep kept in f32 (bf16 would lose ~0.4% of t for t ~ 1000).
    t_col = jnp.zeros((B_pad, 1), jnp.float32).at[:B, :].set(
        x[:, OUT_DIM:IN_DIM].astype(jnp.float32))

    # Weights/biases: constant block index, single-buffered (DMA'd once,
    # VMEM-resident across all grid steps).
    def const_spec(shape):
        return pl.BlockSpec(shape, lambda i: tuple(0 for _ in shape),
                            pipeline_mode=pl.Buffered(1))

    out_padded = pl.pallas_call(
        mlp_kernel,
        out_shape=jax.ShapeDtypeStruct((B_pad, OUT_PAD), jnp.bfloat16),
        grid_spec=pltpu.PrefetchScalarGridSpec(
            num_scalar_prefetch=0,
            grid=grid,
            in_specs=[
                pl.BlockSpec((tile, IN_PAD), lambda i: (i, 0)),   # x pixels tile
                pl.BlockSpec((tile, 1), lambda i: (i, 0)),        # timestep tile
                const_spec((IN_PAD, HID)),    # w1 (pixel rows)
                const_spec((1, HID)),         # w1 timestep row (f32)
                const_spec((1, HID)),         # b1
                const_spec((HID, HID)),       # w2
                const_spec((1, HID)),         # b2
                const_spec((HID, HID)),       # w3
                const_spec((1, HID)),         # b3
                const_spec((HID, OUT_PAD)),   # w4
                const_spec((1, OUT_PAD)),     # b4
            ],
            out_specs=pl.BlockSpec((tile, OUT_PAD), lambda i: (i, 0)),
        ),
        compiler_params=pltpu.CompilerParams(
            dimension_semantics=("parallel",),   # batch axis -> megacore-shardable
            vmem_limit_bytes=48 * 1024 * 1024,   # fits v7x's 64 MiB physical VMEM
        ),
    )(x_pix, t_col, w1_p, w1t, b1_p, w2_p, b2_p, w3_p, b3_p, w4_p, b4_p)

    out = out_padded[:B, :OUT_DIM]
    if out_dtype == jnp.bfloat16:
        return out
    return out.astype(out_dtype)


def init_params(key):
    """Deterministic init mimicking PyTorch nn.Linear default (U(+-1/sqrt(fan_in)))."""
    dims = [(IN_DIM, HID), (HID, HID), (HID, HID), (HID, OUT_DIM)]
    params = []
    for (fan_in, fan_out) in dims:
        key, kw, kb = jax.random.split(key, 3)
        bound = 1.0 / jnp.sqrt(fan_in)
        w = jax.random.uniform(kw, (fan_in, fan_out), jnp.float32, -bound, bound)
        b = jax.random.uniform(kb, (1, fan_out), jnp.float32, -bound, bound)
        params += [w, b]
    return tuple(params)


def reference_forward_f32(x, params):
    w1, b1, w2, b2, w3, b3, w4, b4 = params
    h = jnp.maximum(x @ w1 + b1, 0.0)
    h = jnp.maximum(h @ w2 + b2, 0.0)
    h = jnp.maximum(h @ w3 + b3, 0.0)
    return h @ w4 + b4


def reference_forward_matched(x, params):
    """Pure-JAX reference matching the kernel's numerics: bf16 matmul operands
    with f32 accumulation, f32 timestep rank-1 update, f32 bias/ReLU, bf16
    intermediate activations."""
    w1, b1, w2, b2, w3, b3, w4, b4 = params
    pix = x[:, :OUT_DIM].astype(jnp.bfloat16)
    t = x[:, OUT_DIM:IN_DIM].astype(jnp.float32)

    def lin(h, w, b):
        return jnp.dot(h, w.astype(jnp.bfloat16),
                       preferred_element_type=jnp.float32) + b.reshape(1, -1)

    h = jnp.dot(pix, w1[:OUT_DIM].astype(jnp.bfloat16),
                preferred_element_type=jnp.float32)
    h = h + t * w1[OUT_DIM:IN_DIM].astype(jnp.float32)
    h = jnp.maximum(h + b1.reshape(1, -1), 0.0).astype(jnp.bfloat16)
    h = jnp.maximum(lin(h, w2, b2), 0.0).astype(jnp.bfloat16)
    h = jnp.maximum(lin(h, w3, b3), 0.0).astype(jnp.bfloat16)
    return lin(h, w4, b4)


if __name__ == "__main__":
    key = jax.random.PRNGKey(0)
    key, kx, kt = jax.random.split(key, 3)

    B = 8  # small demo batch (wrapper pads it up to one 16-row tile)
    pixels = jax.random.normal(kx, (B, OUT_DIM), jnp.float32)
    tsteps = jax.random.randint(kt, (B, 1), 0, 1000).astype(jnp.float32)
    x = jnp.concatenate([pixels, tsteps], axis=1)  # [B, 785]

    params = init_params(key)
    prepared = prepare_params(params)

    fwd = jax.jit(lambda xx: simple_mnist_diffusion_forward(xx, prepared))
    out = jax.block_until_ready(fwd(x))
    assert out.shape == (B, OUT_DIM)
    assert out.dtype == jnp.float32

    # Check vs a reference that uses the kernel's exact bf16/f32 numerics
    # (output compared after the kernel's bf16 store rounding).
    ref = reference_forward_matched(x, params)
    ref_bf16 = ref.astype(jnp.bfloat16).astype(jnp.float32)
    assert jnp.allclose(out, ref_bf16, rtol=5e-2, atol=5e-2), \
        "mismatch vs bf16-matched JAX reference"

    print("KERNEL_OK")
</pallas_src>

<mosaic_0001>
module attributes {stable_mosaic.version = 11 : i64} {
  func.func @mlp_kernel(%arg0: i32, %arg1: memref<16x896xbf16, #tpu.memory_space<vmem>>, %arg2: memref<16x1xf32, #tpu.memory_space<vmem>>, %arg3: memref<896x256xbf16, #tpu.memory_space<vmem>>, %arg4: memref<1x256xf32, #tpu.memory_space<vmem>>, %arg5: memref<1x256xf32, #tpu.memory_space<vmem>>, %arg6: memref<256x256xbf16, #tpu.memory_space<vmem>>, %arg7: memref<1x256xf32, #tpu.memory_space<vmem>>, %arg8: memref<256x256xbf16, #tpu.memory_space<vmem>>, %arg9: memref<1x256xf32, #tpu.memory_space<vmem>>, %arg10: memref<256x896xbf16, #tpu.memory_space<vmem>>, %arg11: memref<1x896xf32, #tpu.memory_space<vmem>>, %arg12: memref<16x896xbf16, #tpu.memory_space<vmem>>) attributes {dimension_semantics = [#tpu.dimension_semantics<parallel>], iteration_bounds = array<i64: 1>, scalar_prefetch = 0 : i64, scratch_operands = 0 : i64, tpu.core_type = #tpu.core_type<tc>, window_params = [{transform_indices = @transform_0, window_bounds = array<i64: 16, 896>}, {transform_indices = @transform_1, window_bounds = array<i64: 16, 1>}, {pipeline_mode = #tpu.pipeline_mode<synchronous>, transform_indices = @transform_2, window_bounds = array<i64: 896, 256>}, {pipeline_mode = #tpu.pipeline_mode<synchronous>, transform_indices = @transform_3, window_bounds = array<i64: 1, 256>}, {pipeline_mode = #tpu.pipeline_mode<synchronous>, transform_indices = @transform_4, window_bounds = array<i64: 1, 256>}, {pipeline_mode = #tpu.pipeline_mode<synchronous>, transform_indices = @transform_5, window_bounds = array<i64: 256, 256>}, {pipeline_mode = #tpu.pipeline_mode<synchronous>, transform_indices = @transform_6, window_bounds = array<i64: 1, 256>}, {pipeline_mode = #tpu.pipeline_mode<synchronous>, transform_indices = @transform_7, window_bounds = array<i64: 256, 256>}, {pipeline_mode = #tpu.pipeline_mode<synchronous>, transform_indices = @transform_8, window_bounds = array<i64: 1, 256>}, {pipeline_mode = #tpu.pipeline_mode<synchronous>, transform_indices = @transform_9, window_bounds = array<i64: 256, 896>}, {pipeline_mode = #tpu.pipeline_mode<synchronous>, transform_indices = @transform_10, window_bounds = array<i64: 1, 896>}, {transform_indices = @transform_11, window_bounds = array<i64: 16, 896>}]} {
    %c0 = arith.constant 0 : index
    %c0_0 = arith.constant 0 : index
    %0 = vector.load %arg1[%c0, %c0_0] : memref<16x896xbf16, #tpu.memory_space<vmem>>, vector<16x896xbf16>
    %c0_1 = arith.constant 0 : index
    %c0_2 = arith.constant 0 : index
    %1 = vector.load %arg3[%c0_1, %c0_2] : memref<896x256xbf16, #tpu.memory_space<vmem>>, vector<896x256xbf16>
    %cst = arith.constant dense<0.000000e+00> : vector<16x256xf32>
    %2 = tpu.matmul %0, %1, %cst {dimension_numbers = #tpu.dot_dimension_numbers<[1], [0], [0], [1], [0, 0, 1, 1], [], []>} : vector<16x896xbf16>, vector<896x256xbf16>, vector<16x256xf32> -> vector<16x256xf32>
    %c0_3 = arith.constant 0 : index
    %c0_4 = arith.constant 0 : index
    %3 = vector.load %arg2[%c0_3, %c0_4] : memref<16x1xf32, #tpu.memory_space<vmem>>, vector<16x1xf32>
    %c0_5 = arith.constant 0 : index
    %c0_6 = arith.constant 0 : index
    %4 = vector.load %arg4[%c0_5, %c0_6] : memref<1x256xf32, #tpu.memory_space<vmem>>, vector<1x256xf32>
    %5 = vector.broadcast %3 : vector<16x1xf32> to vector<16x256xf32>
    %6 = vector.broadcast %4 : vector<1x256xf32> to vector<16x256xf32>
    %7 = arith.mulf %5, %6 : vector<16x256xf32>
    %8 = arith.addf %2, %7 : vector<16x256xf32>
    %c0_7 = arith.constant 0 : index
    %c0_8 = arith.constant 0 : index
    %9 = vector.load %arg5[%c0_7, %c0_8] : memref<1x256xf32, #tpu.memory_space<vmem>>, vector<1x256xf32>
    %10 = vector.broadcast %9 : vector<1x256xf32> to vector<16x256xf32>
    %11 = arith.addf %8, %10 : vector<16x256xf32>
    %cst_9 = arith.constant 0.000000e+00 : f32
    %12 = vector.broadcast %cst_9 : f32 to vector<16x256xf32>
    %13 = arith.maximumf %11, %12 : vector<16x256xf32>
    %14 = arith.truncf %13 : vector<16x256xf32> to vector<16x256xbf16>
    %c0_10 = arith.constant 0 : index
    %c0_11 = arith.constant 0 : index
    %15 = vector.load %arg6[%c0_10, %c0_11] : memref<256x256xbf16, #tpu.memory_space<vmem>>, vector<256x256xbf16>
    %cst_12 = arith.constant dense<0.000000e+00> : vector<16x256xf32>
    %16 = tpu.matmul %14, %15, %cst_12 {dimension_numbers = #tpu.dot_dimension_numbers<[1], [0], [0], [1], [0, 0, 1, 1], [], []>} : vector<16x256xbf16>, vector<256x256xbf16>, vector<16x256xf32> -> vector<16x256xf32>
    %c0_13 = arith.constant 0 : index
    %c0_14 = arith.constant 0 : index
    %17 = vector.load %arg7[%c0_13, %c0_14] : memref<1x256xf32, #tpu.memory_space<vmem>>, vector<1x256xf32>
    %18 = vector.broadcast %17 : vector<1x256xf32> to vector<16x256xf32>
    %19 = arith.addf %16, %18 : vector<16x256xf32>
    %cst_15 = arith.constant 0.000000e+00 : f32
    %20 = vector.broadcast %cst_15 : f32 to vector<16x256xf32>
    %21 = arith.maximumf %19, %20 : vector<16x256xf32>
    %22 = arith.truncf %21 : vector<16x256xf32> to vector<16x256xbf16>
    %c0_16 = arith.constant 0 : index
    %c0_17 = arith.constant 0 : index
    %23 = vector.load %arg8[%c0_16, %c0_17] : memref<256x256xbf16, #tpu.memory_space<vmem>>, vector<256x256xbf16>
    %cst_18 = arith.constant dense<0.000000e+00> : vector<16x256xf32>
    %24 = tpu.matmul %22, %23, %cst_18 {dimension_numbers = #tpu.dot_dimension_numbers<[1], [0], [0], [1], [0, 0, 1, 1], [], []>} : vector<16x256xbf16>, vector<256x256xbf16>, vector<16x256xf32> -> vector<16x256xf32>
    %c0_19 = arith.constant 0 : index
    %c0_20 = arith.constant 0 : index
    %25 = vector.load %arg9[%c0_19, %c0_20] : memref<1x256xf32, #tpu.memory_space<vmem>>, vector<1x256xf32>
    %26 = vector.broadcast %25 : vector<1x256xf32> to vector<16x256xf32>
    %27 = arith.addf %24, %26 : vector<16x256xf32>
    %cst_21 = arith.constant 0.000000e+00 : f32
    %28 = vector.broadcast %cst_21 : f32 to vector<16x256xf32>
    %29 = arith.maximumf %27, %28 : vector<16x256xf32>
    %30 = arith.truncf %29 : vector<16x256xf32> to vector<16x256xbf16>
    %c0_22 = arith.constant 0 : index
    %c0_23 = arith.constant 0 : index
    %31 = vector.load %arg10[%c0_22, %c0_23] : memref<256x896xbf16, #tpu.memory_space<vmem>>, vector<256x896xbf16>
    %cst_24 = arith.constant dense<0.000000e+00> : vector<16x896xf32>
    %32 = tpu.matmul %30, %31, %cst_24 {dimension_numbers = #tpu.dot_dimension_numbers<[1], [0], [0], [1], [0, 0, 1, 1], [], []>} : vector<16x256xbf16>, vector<256x896xbf16>, vector<16x896xf32> -> vector<16x896xf32>
    %c0_25 = arith.constant 0 : index
    %c0_26 = arith.constant 0 : index
    %33 = vector.load %arg11[%c0_25, %c0_26] : memref<1x896xf32, #tpu.memory_space<vmem>>, vector<1x896xf32>
    %34 = vector.broadcast %33 : vector<1x896xf32> to vector<16x896xf32>
    %35 = arith.addf %32, %34 : vector<16x896xf32>
    %36 = arith.truncf %35 : vector<16x896xf32> to vector<16x896xbf16>
    %c0_27 = arith.constant 0 : index
    %c0_28 = arith.constant 0 : index
    %37 = vector.load %arg12[%c0_27, %c0_28] : memref<16x896xbf16, #tpu.memory_space<vmem>>, vector<16x896xbf16>
    tpu.vector_store %arg12[%c0_27, %c0_28], %36 {strides = array<i32>} : memref<16x896xbf16, #tpu.memory_space<vmem>>, vector<16x896xbf16>,
    return
  }
  func.func @transform_0(%arg0: i32) -> (i32, i32) {
    %c0_i32 = arith.constant 0 : i32
    %c0_i32_0 = arith.constant 0 : i32
    return %arg0, %c0_i32 : i32, i32
  }
  func.func @transform_1(%arg0: i32) -> (i32, i32) {
    %c0_i32 = arith.constant 0 : i32
    %c0_i32_0 = arith.constant 0 : i32
    return %arg0, %c0_i32 : i32, i32
  }
  func.func @transform_2(%arg0: i32) -> (i32, i32) {
    %c0_i32 = arith.constant 0 : i32
    %c0_i32_0 = arith.constant 0 : i32
    %c0_i32_1 = arith.constant 0 : i32
    return %c0_i32, %c0_i32_0 : i32, i32
  }
  func.func @transform_3(%arg0: i32) -> (i32, i32) {
    %c0_i32 = arith.constant 0 : i32
    %c0_i32_0 = arith.constant 0 : i32
    %c0_i32_1 = arith.constant 0 : i32
    return %c0_i32, %c0_i32_0 : i32, i32
  }
  func.func @transform_4(%arg0: i32) -> (i32, i32) {
    %c0_i32 = arith.constant 0 : i32
    %c0_i32_0 = arith.constant 0 : i32
    %c0_i32_1 = arith.constant 0 : i32
    return %c0_i32, %c0_i32_0 : i32, i32
  }
  func.func @transform_5(%arg0: i32) -> (i32, i32) {
    %c0_i32 = arith.constant 0 : i32
    %c0_i32_0 = arith.constant 0 : i32
    %c0_i32_1 = arith.constant 0 : i32
    return %c0_i32, %c0_i32_0 : i32, i32
  }
  func.func @transform_6(%arg0: i32) -> (i32, i32) {
    %c0_i32 = arith.constant 0 : i32
    %c0_i32_0 = arith.constant 0 : i32
    %c0_i32_1 = arith.constant 0 : i32
    return %c0_i32, %c0_i32_0 : i32, i32
  }
  func.func @transform_7(%arg0: i32) -> (i32, i32) {
    %c0_i32 = arith.constant 0 : i32
    %c0_i32_0 = arith.constant 0 : i32
    %c0_i32_1 = arith.constant 0 : i32
    return %c0_i32, %c0_i32_0 : i32, i32
  }
  func.func @transform_8(%arg0: i32) -> (i32, i32) {
    %c0_i32 = arith.constant 0 : i32
    %c0_i32_0 = arith.constant 0 : i32
    %c0_i32_1 = arith.constant 0 : i32
    return %c0_i32, %c0_i32_0 : i32, i32
  }
  func.func @transform_9(%arg0: i32) -> (i32, i32) {
    %c0_i32 = arith.constant 0 : i32
    %c0_i32_0 = arith.constant 0 : i32
    %c0_i32_1 = arith.constant 0 : i32
    return %c0_i32, %c0_i32_0 : i32, i32
  }
  func.func @transform_10(%arg0: i32) -> (i32, i32) {
    %c0_i32 = arith.constant 0 : i32
    %c0_i32_0 = arith.constant 0 : i32
    %c0_i32_1 = arith.constant 0 : i32
    return %c0_i32, %c0_i32_0 : i32, i32
  }
  func.func @transform_11(%arg0: i32) -> (i32, i32) {
    %c0_i32 = arith.constant 0 : i32
    %c0_i32_0 = arith.constant 0 : i32
    return %arg0, %c0_i32 : i32, i32
  }
}

</mosaic_0001>

<bundles_post_ra>
// kernel: _lambda_.1
= control target key start
LH: loop header
LB: loop body
LE: loop exit
PB: predicated region body
PF: predicated region fallthrough
CT: control target
= control target key end

     0   :  { %v3235_v54 = vmov 0   ;;  %s4263_s2 = inlined_call_operand.vmem [shape: bf16[896,256], index: 2, kind: input, shape index: {}]   ;;  %s4264_s0 = inlined_call_operand.vmem [shape: bf16[16,896], index: 0, kind: input, shape index: {}]   ;;  %s4265_s1 = inlined_call_operand.vmem [shape: f32[16,1], index: 1, kind: input, shape index: {}]   ;;  %s4266_s5 = inlined_call_operand.vmem [shape: bf16[256,256], index: 5, kind: input, shape index: {}]   ;;  %s4267_s7 = inlined_call_operand.vmem [shape: bf16[256,256], index: 7, kind: input, shape index: {}]   ;;  %s4268_s3 = inlined_call_operand.vmem [shape: f32[1,256], index: 3, kind: input, shape index: {}]   ;;  %s4269_s4 = inlined_call_operand.vmem [shape: f32[1,256], index: 4, kind: input, shape index: {}]   ;;  %s4270_s9 = inlined_call_operand.vmem [shape: bf16[256,896], index: 9, kind: input, shape index: {}]   ;;  %s4271_s6 = inlined_call_operand.vmem [shape: f32[1,256], index: 6, kind: input, shape index: {}]   ;;  %s4272_s8 = inlined_call_operand.vmem [shape: f32[1,256], index: 8, kind: input, shape index: {}]   ;;  %s4273_s10 = inlined_call_operand.vmem [shape: f32[1,896], index: 10, kind: input, shape index: {}]   ;;  %s4274_s11 = inlined_call_operand.vmem [shape: bf16[16,896], index: 11, kind: output, shape index: {}]  }
   0x1   :  { %v2801_v0 = vld [vmem:[%s4263_s2 + $0x4] ss:$8 sps:$4 sm:$0xff]   ;;  %v2803_v1 = vld [vmem:[%s4263_s2] ss:$8 sps:$4 sm:$0xff]   ;;  %v2804_v2 = vld [vmem:[%s4263_s2 + $0x14] ss:$8 sps:$4 sm:$0xff]   ;;  %2800 = vset.pattern.permute.xlu0 %v3235_v54 }
   0x2   :  { %783 = vmatprep.subr.bf16.mxu0 %v2801_v0  ;;  %v2806_v3 = vld [vmem:[%s4263_s2 + $0x10] ss:$8 sps:$4 sm:$0xff]   ;;  %v2807_v4 = vld [vmem:[%s4263_s2 + $0x24] ss:$8 sps:$4 sm:$0xff]   ;;  %v2809_v5 = vld [vmem:[%s4263_s2 + $0x20] ss:$8 sps:$4 sm:$0xff]  }
   0x3   :  { %784 = vmatpush1.bf16.msra.mxu0 %v2803_v1  ;;  %v2810_v6 = vld [vmem:[%s4263_s2 + $0x34] ss:$8 sps:$4 sm:$0xff]   ;;  %v2812_v7 = vld [vmem:[%s4263_s2 + $0x30] ss:$8 sps:$4 sm:$0xff]   ;;  %v2813_v8 = vld [vmem:[%s4263_s2 + $0x44] ss:$8 sps:$4 sm:$0xff]  }
   0x4   :  { %785 = vmatprep.subr.bf16.mxu0 %v2804_v2  ;;  %v2815_v9 = vld [vmem:[%s4263_s2 + $0x40] ss:$8 sps:$4 sm:$0xff]   ;;  %v2816_v10 = vld [vmem:[%s4263_s2 + $0x54] ss:$8 sps:$4 sm:$0xff]   ;;  %v2818_v11 = vld [vmem:[%s4263_s2 + $0x50] ss:$8 sps:$4 sm:$0xff]  }
   0x5   :  { %v2819_v12 = vld [vmem:[%s4263_s2 + $0x64] ss:$8 sps:$4 sm:$0xff]   ;;  %v2821_v14 = vld [vmem:[%s4263_s2 + $0x60] ss:$8 sps:$4 sm:$0xff]   ;;  %v2822_v15 = vld [vmem:[%s4263_s2 + $0x74] ss:$8 sps:$4 sm:$0xff]  }
   0x6   :  { %v2851_v13 = vld [vmem:[%s4264_s0 + $0x4] ss:$28 sps:$4 sm:$0xff]   ;;  %v2824_v16 = vld [vmem:[%s4263_s2 + $0x70] ss:$8 sps:$4 sm:$0xff]   ;;  %v2828_v19 = vld [vmem:[%s4263_s2 + $0x94] ss:$8 sps:$4 sm:$0xff]  }
   0x7   :  { %786 = vmatpush1.bf16.msra.mxu0 %v2806_v3  ;;  %815 = vmatprep.mubr.bf16.mxu0 %v2851_v13  ;;  %v2825_v17 = vld [vmem:[%s4263_s2 + $0x84] ss:$8 sps:$4 sm:$0xff]   ;;  %v2827_v18 = vld [vmem:[%s4263_s2 + $0x80] ss:$8 sps:$4 sm:$0xff]   ;;  %v2830_v20 = vld [vmem:[%s4263_s2 + $0x90] ss:$8 sps:$4 sm:$0xff]  }
   0x8   :  { %787 = vmatprep.subr.bf16.mxu0 %v2807_v4  ;;  %v2831_v21 = vld [vmem:[%s4263_s2 + $0xa4] ss:$8 sps:$4 sm:$0xff]   ;;  %v2833_v22 = vld [vmem:[%s4263_s2 + $0xa0] ss:$8 sps:$4 sm:$0xff]   ;;  %v2834_v23 = vld [vmem:[%s4263_s2 + $0xb4] ss:$8 sps:$4 sm:$0xff]  }
   0x9   :  { %v2836_v24 = vld [vmem:[%s4263_s2 + $0xb0] ss:$8 sps:$4 sm:$0xff]   ;;  %v2837_v25 = vld [vmem:[%s4263_s2 + $0xc4] ss:$8 sps:$4 sm:$0xff]   ;;  %v2839_v26 = vld [vmem:[%s4263_s2 + $0xc0] ss:$8 sps:$4 sm:$0xff]  }
   0xa   :  { %v2840_v27 = vld [vmem:[%s4263_s2 + $0xd4] ss:$8 sps:$4 sm:$0xff]   ;;  %v2842_v28 = vld [vmem:[%s4263_s2 + $0xd0] ss:$8 sps:$4 sm:$0xff]   ;;  %v2843_v29 = vld [vmem:[%s4263_s2 + $0xe4] ss:$8 sps:$4 sm:$0xff]  }
   0xb   :  { %788 = vmatpush1.bf16.msra.mxu0 %v2809_v5  ;;  %v2845_v30 = vld [vmem:[%s4263_s2 + $0xe0] ss:$8 sps:$4 sm:$0xff]   ;;  %v2846_v31 = vld [vmem:[%s4263_s2 + $0xf4] ss:$8 sps:$4 sm:$0xff]   ;;  %v2848_v32 = vld [vmem:[%s4263_s2 + $0xf0] ss:$8 sps:$4 sm:$0xff]  }
   0xc   :  { %789 = vmatprep.subr.bf16.mxu0 %v2810_v6  ;;  %v2854_v33 = vld [vmem:[%s4263_s2 + $0x104] ss:$8 sps:$4 sm:$0xff]   ;;  %v2849_v34 = vld [vmem:[%s4264_s0] ss:$28 sps:$4 sm:$0xff]   ;;  %v2855_v38 = vld [vmem:[%s4263_s2 + $0x110] ss:$8 sps:$4 sm:$0xff]  }
   0xd   :  { %v2852_v35 = vld [vmem:[%s4263_s2 + $0x100] ss:$8 sps:$4 sm:$0xff]   ;;  %v2857_v37 = vld [vmem:[%s4263_s2 + $0x114] ss:$8 sps:$4 sm:$0xff]   ;;  %v2860_v39 = vld [vmem:[%s4263_s2 + $0x124] ss:$8 sps:$4 sm:$0xff]  }
   0xe   :  { %v2902_v36 = vld [vmem:[%s4264_s0 + $0xc] ss:$28 sps:$4 sm:$0xff]   ;;  %v2863_v41 = vld [vmem:[%s4263_s2 + $0x134] ss:$8 sps:$4 sm:$0xff]   ;;  %v2861_v42 = vld [vmem:[%s4263_s2 + $0x130] ss:$8 sps:$4 sm:$0xff]  }
   0xf   :  { %790 = vmatpush1.bf16.msra.mxu0 %v2812_v7  ;;  %v2858_v40 = vld [vmem:[%s4263_s2 + $0x120] ss:$8 sps:$4 sm:$0xff]   ;;  %v2866_v43 = vld [vmem:[%s4263_s2 + $0x144] ss:$8 sps:$4 sm:$0xff]   ;;  %v2869_v45 = vld [vmem:[%s4263_s2 + $0x154] ss:$8 sps:$4 sm:$0xff]  }
  0x10   :  { %791 = vmatprep.subr.bf16.mxu0 %v2813_v8  ;;  %v2864_v44 = vld [vmem:[%s4263_s2 + $0x140] ss:$8 sps:$4 sm:$0xff]   ;;  %v2867_v46 = vld [vmem:[%s4263_s2 + $0x150] ss:$8 sps:$4 sm:$0xff]   ;;  %v2872_v47 = vld [vmem:[%s4263_s2 + $0x164] ss:$8 sps:$4 sm:$0xff]  }
  0x11   :  { %v2870_v48 = vld [vmem:[%s4263_s2 + $0x160] ss:$8 sps:$4 sm:$0xff]   ;;  %v2875_v49 = vld [vmem:[%s4263_s2 + $0x174] ss:$8 sps:$4 sm:$0xff]   ;;  %v2873_v50 = vld [vmem:[%s4263_s2 + $0x170] ss:$8 sps:$4 sm:$0xff]  }
  0x12   :  { %v2878_v51 = vld [vmem:[%s4263_s2 + $0x184] ss:$8 sps:$4 sm:$0xff]   ;;  %v2876_v52 = vld [vmem:[%s4263_s2 + $0x180] ss:$8 sps:$4 sm:$0xff]   ;;  %v2881_v53 = vld [vmem:[%s4263_s2 + $0x194] ss:$8 sps:$4 sm:$0xff]  }
  0x13   :  { %792 = vmatpush1.bf16.msra.mxu0 %v2815_v9  ;;  %v2879_v55 = vld [vmem:[%s4263_s2 + $0x190] ss:$8 sps:$4 sm:$0xff]   ;;  %v2884_v56 = vld [vmem:[%s4263_s2 + $0x1a4] ss:$8 sps:$4 sm:$0xff]   ;;  %v2981_v60 = vld [vmem:[%s4266_s5] ss:$8 sps:$4 sm:$0xff]  }
  0x14   :  { %793 = vmatprep.subr.bf16.mxu0 %v2816_v10  ;;  %v159_v57 = vld [vmem:[%s4265_s1] sm:$0xff]  ;;  %v160_v58 = vld [vmem:[%s4265_s1 + $0x8] sm:$0xff]  ;;  %v2982_v61 = vld [vmem:[%s4266_s5 + $0x14] ss:$8 sps:$4 sm:$0xff]  }
  0x15   :  { %164 = vperm.xlu0 %2800, %v159_v57   ;;  %v2979_v59 = vld [vmem:[%s4266_s5 + $0x4] ss:$8 sps:$4 sm:$0xff]   ;;  %v2882_v62 = vld [vmem:[%s4263_s2 + $0x1a0] ss:$8 sps:$4 sm:$0xff]   ;;  %v2984_v63 = vld [vmem:[%s4266_s5 + $0x10] ss:$8 sps:$4 sm:$0xff]  }
  0x16   :  { %1181 = vmatprep.subr.bf16.mxu1 %v2979_v59  ;;  %v2887_v0 = vld [vmem:[%s4263_s2 + $0x1b4] ss:$8 sps:$4 sm:$0xff]   ;;  %v2985_v1 = vld [vmem:[%s4266_s5 + $0x24] ss:$8 sps:$4 sm:$0xff]   ;;  %v2885_v2 = vld [vmem:[%s4263_s2 + $0x1b0] ss:$8 sps:$4 sm:$0xff]  }
  0x17   :  { %794 = vmatpush1.bf16.msra.mxu0 %v2818_v11  ;;  %1182 = vmatpush1.bf16.msra.mxu1 %v2981_v60  ;;  %v2987_v3 = vld [vmem:[%s4266_s5 + $0x20] ss:$8 sps:$4 sm:$0xff]   ;;  %v2890_v4 = vld [vmem:[%s4263_s2 + $0x1c4] ss:$8 sps:$4 sm:$0xff]   ;;  %v2988_v5 = vld [vmem:[%s4266_s5 + $0x34] ss:$8 sps:$4 sm:$0xff]  }
  0x18   :  { %795 = vmatprep.subr.bf16.mxu0 %v2819_v12  ;;  %1183 = vmatprep.subr.bf16.mxu1 %v2982_v61  ;;  %v2888_v6 = vld [vmem:[%s4263_s2 + $0x1c0] ss:$8 sps:$4 sm:$0xff]   ;;  %v2990_v7 = vld [vmem:[%s4266_s5 + $0x30] ss:$8 sps:$4 sm:$0xff]   ;;  %v2893_v8 = vld [vmem:[%s4263_s2 + $0x1d4] ss:$8 sps:$4 sm:$0xff]  }
  0x19   :  { %169 = vperm.xlu0 %2800, %v160_v58   ;;  %v2991_v9 = vld [vmem:[%s4266_s5 + $0x44] ss:$8 sps:$4 sm:$0xff]   ;;  %v2891_v10 = vld [vmem:[%s4263_s2 + $0x1d0] ss:$8 sps:$4 sm:$0xff]   ;;  %v2993_v12 = vld [vmem:[%s4266_s5 + $0x40] ss:$8 sps:$4 sm:$0xff]  }
  0x1a   :  { %v2896_v11 = vld [vmem:[%s4263_s2 + $0x1e4] ss:$8 sps:$4 sm:$0xff]   ;;  %v2994_v13 = vld [vmem:[%s4266_s5 + $0x54] ss:$8 sps:$4 sm:$0xff]   ;;  %v2936_v58 = vld [vmem:[%s4263_s2 + $0x2b0] ss:$8 sps:$4 sm:$0xff]  }
  0x1b   :  { %796 = vmatpush1.bf16.msra.mxu0 %v2821_v14  ;;  %1184 = vmatpush1.bf16.msra.mxu1 %v2984_v63  ;;  %v2894_v14 = vld [vmem:[%s4263_s2 + $0x1e0] ss:$8 sps:$4 sm:$0xff]   ;;  %v2938_v57 = vld [vmem:[%s4263_s2 + $0x2b4] ss:$8 sps:$4 sm:$0xff]   ;;  %v2941_v59 = vld [vmem:[%s4263_s2 + $0x2c4] ss:$8 sps:$4 sm:$0xff]  }
  0x1c   :  { %797 = vmatprep.subr.bf16.mxu0 %v2822_v15  ;;  %1185 = vmatprep.subr.bf16.mxu1 %v2985_v1  ;;  %v2996_v15 = vld [vmem:[%s4266_s5 + $0x50] ss:$8 sps:$4 sm:$0xff]   ;;  %v2939_v60 = vld [vmem:[%s4263_s2 + $0x2c0] ss:$8 sps:$4 sm:$0xff]   ;;  %v2944_v61 = vld [vmem:[%s4263_s2 + $0x2d4] ss:$8 sps:$4 sm:$0xff]  }
  0x1d   :  { %v2947_v63 = vld [vmem:[%s4263_s2 + $0x2e4] ss:$8 sps:$4 sm:$0xff]   ;;  %v2950_v1 = vld [vmem:[%s4263_s2 + $0x2f4] ss:$8 sps:$4 sm:$0xff]  }
  0x1f   :  { %798 = vmatpush1.bf16.msra.mxu0 %v2824_v16  ;;  %1186 = vmatpush1.bf16.msra.mxu1 %v2987_v3  ;;  %v2899_v16 = vld [vmem:[%s4263_s2 + $0x1f4] ss:$8 sps:$4 sm:$0xff]   ;;  %v2956_v3 = vld [vmem:[%s4263_s2 + $0x304] ss:$8 sps:$4 sm:$0xff]  }
  0x20   :  { %799 = vmatprep.subr.bf16.mxu0 %v2825_v17  ;;  %1187 = vmatprep.subr.bf16.mxu1 %v2988_v5  ;;  %v2997_v17 = vld [vmem:[%s4266_s5 + $0x64] ss:$8 sps:$4 sm:$0xff]   ;;  %v2954_v5 = vld [vmem:[%s4263_s2 + $0x300] ss:$8 sps:$4 sm:$0xff]  }
  0x23   :  { %800 = vmatpush1.bf16.msra.mxu0 %v2827_v18  ;;  %1188 = vmatpush1.bf16.msra.mxu1 %v2990_v7  ;;  %v2897_v18 = vld [vmem:[%s4263_s2 + $0x1f0] ss:$8 sps:$4 sm:$0xff]  }
  0x24   :  { %801 = vmatprep.subr.bf16.mxu0 %v2828_v19  ;;  %1189 = vmatprep.subr.bf16.mxu1 %v2991_v9  ;;  %v2999_v19 = vld [vmem:[%s4266_s5 + $0x60] ss:$8 sps:$4 sm:$0xff]   ;;  %v2957_v7 = vld [vmem:[%s4263_s2 + $0x310] ss:$8 sps:$4 sm:$0xff]  }
  0x25   :  { %v2960_v9 = vld [vmem:[%s4263_s2 + $0x320] ss:$8 sps:$4 sm:$0xff]  }
  0x27   :  { %802 = vmatpush1.bf16.msra.mxu0 %v2830_v20  ;;  %1190 = vmatpush1.bf16.msra.mxu1 %v2993_v12  ;;  %v2905_v20 = vld [vmem:[%s4263_s2 + $0x204] ss:$8 sps:$4 sm:$0xff]   ;;  %v2966_v12 = vld [vmem:[%s4263_s2 + $0x340] ss:$8 sps:$4 sm:$0xff]  }
  0x28   :  { %803 = vmatprep.subr.bf16.mxu0 %v2831_v21  ;;  %1191 = vmatprep.subr.bf16.mxu1 %v2994_v13  ;;  %v3000_v21 = vld [vmem:[%s4266_s5 + $0x74] ss:$8 sps:$4 sm:$0xff]  }
  0x29   :  { %v2971_v13 = vld [vmem:[%s4263_s2 + $0x354] ss:$8 sps:$4 sm:$0xff]  }
  0x2b   :  { %804 = vmatpush1.bf16.msra.mxu0 %v2833_v22  ;;  %1192 = vmatpush1.bf16.msra.mxu1 %v2996_v15  ;;  %v2900_v22 = vld [vmem:[%s4264_s0 + $0x8] ss:$28 sps:$4 sm:$0xff]  }
  0x2c   :  { %805 = vmatprep.subr.bf16.mxu0 %v2834_v23  ;;  %1193 = vmatprep.subr.bf16.mxu1 %v2997_v17  ;;  %v2903_v23 = vld [vmem:[%s4263_s2 + $0x200] ss:$8 sps:$4 sm:$0xff]   ;;  %v2974_v15 = vld [vmem:[%s4263_s2 + $0x364] ss:$8 sps:$4 sm:$0xff]   ;;  %v2977_v17 = vld [vmem:[%s4263_s2 + $0x374] ss:$8 sps:$4 sm:$0xff]  }
  0x2f   :  { %806 = vmatpush1.bf16.msra.mxu0 %v2836_v24  ;;  %v2953_v24 = vld [vmem:[%s4264_s0 + $0x14] ss:$28 sps:$4 sm:$0xff]   ;;  %1194 = vmatpush1.bf16.msra.mxu1 %v2999_v19 }
  0x30   :  { %807 = vmatprep.subr.bf16.mxu0 %v2837_v25  ;;  %v2908_v25 = vld [vmem:[%s4263_s2 + $0x214] ss:$8 sps:$4 sm:$0xff]   ;;  %1195 = vmatprep.subr.bf16.mxu1 %v3000_v21  ;;  %v3020_v21 = vld [vmem:[%s4266_s5 + $0xd0] ss:$8 sps:$4 sm:$0xff]  }
  0x31   :  { %v2978_v19 = vld [vmem:[%s4264_s0 + $0x18] ss:$28 sps:$4 sm:$0xff]  }
  0x33   :  { %808 = vmatpush1.bf16.msra.mxu0 %v2839_v26  ;;  %v3002_v26 = vld [vmem:[%s4266_s5 + $0x70] ss:$8 sps:$4 sm:$0xff]  }
  0x34   :  { %809 = vmatprep.subr.bf16.mxu0 %v2840_v27  ;;  %v3003_v27 = vld [vmem:[%s4266_s5 + $0x84] ss:$8 sps:$4 sm:$0xff]   ;;  %1196 = vmatpush1.bf16.msra.mxu1 %v3002_v26 }
  0x35   :  { %1197 = vmatprep.subr.bf16.mxu1 %v3003_v27  ;;  %v3029_v26 = vld [vmem:[%s4267_s7 + $0x4] ss:$8 sps:$4 sm:$0xff]   ;;  %v173_v27 = vlaneseq }
  0x37   :  { %810 = vmatpush1.bf16.msra.mxu0 %v2842_v28  ;;  %v2906_v28 = vld [vmem:[%s4263_s2 + $0x210] ss:$8 sps:$4 sm:$0xff]  }
  0x38   :  { %811 = vmatprep.subr.bf16.mxu0 %v2843_v29  ;;  %v2911_v29 = vld [vmem:[%s4263_s2 + $0x224] ss:$8 sps:$4 sm:$0xff]  }
  0x3b   :  { %812 = vmatpush1.bf16.msra.mxu0 %v2845_v30  ;;  %v3005_v30 = vld [vmem:[%s4266_s5 + $0x80] ss:$8 sps:$4 sm:$0xff]  }
  0x3c   :  { %813 = vmatprep.subr.bf16.mxu0 %v2846_v31  ;;  %v3006_v31 = vld [vmem:[%s4266_s5 + $0x94] ss:$8 sps:$4 sm:$0xff]   ;;  %1198 = vmatpush1.bf16.msra.mxu1 %v3005_v30  ;;  %v161_v30 = vld [vmem:[%s4268_s3] sm:$0x3] }
  0x3d   :  { %1199 = vmatprep.subr.bf16.mxu1 %v3006_v31 }
  0x3f   :  { %814 = vmatpush1.bf16.msra.mxu0 %v2848_v32  ;;  %v2909_v32 = vld [vmem:[%s4263_s2 + $0x220] ss:$8 sps:$4 sm:$0xff]  }
  0x40   :  { %826 = vmatprep.subr.bf16.mxu0 %v2854_v33  ;;  %v2914_v33 = vld [vmem:[%s4263_s2 + $0x234] ss:$8 sps:$4 sm:$0xff]  }
  0x42   :  { %816 = vmatmul.mubr.bf16.vlgmr.msra.gmra.mrb[0].mxu0 %v2849_v34  ;;  %v3008_v34 = vld [vmem:[%s4266_s5 + $0x90] ss:$8 sps:$4 sm:$0xff]  }
  0x43   :  { %827 = vmatpush1.bf16.msra.mxu0 %v2852_v35  ;;  %858 = vmatprep.mubr.bf16.mxu0 %v2902_v36  ;;  %v3009_v35 = vld [vmem:[%s4266_s5 + $0xa4] ss:$8 sps:$4 sm:$0xff]   ;;  %v2912_v36 = vld [vmem:[%s4263_s2 + $0x230] ss:$8 sps:$4 sm:$0xff]  }
  0x44   :  { %828 = vmatprep.subr.bf16.mxu0 %v2857_v37  ;;  %v2917_v37 = vld [vmem:[%s4263_s2 + $0x244] ss:$8 sps:$4 sm:$0xff]   ;;  %1200 = vmatpush1.bf16.msra.mxu1 %v3008_v34 }
  0x45   :  { %1201 = vmatprep.subr.bf16.mxu1 %v3009_v35  ;;  %v955_v35 = vld [vmem:[%s4269_s4] sm:$0x3] }
  0x47   :  { %829 = vmatpush1.bf16.msra.mxu0 %v2855_v38  ;;  %v3011_v38 = vld [vmem:[%s4266_s5 + $0xa0] ss:$8 sps:$4 sm:$0xff]  }
  0x48   :  { %830 = vmatprep.subr.bf16.mxu0 %v2860_v39  ;;  %v3012_v39 = vld [vmem:[%s4266_s5 + $0xb4] ss:$8 sps:$4 sm:$0xff]   ;;  %1202 = vmatpush1.bf16.msra.mxu1 %v3011_v38 }
  0x49   :  { %1203 = vmatprep.subr.bf16.mxu1 %v3012_v39 }
  0x4b   :  { %831 = vmatpush1.bf16.msra.mxu0 %v2858_v40  ;;  %v2915_v40 = vld [vmem:[%s4263_s2 + $0x240] ss:$8 sps:$4 sm:$0xff]  }
  0x4c   :  { %832 = vmatprep.subr.bf16.mxu0 %v2863_v41  ;;  %v2920_v41 = vld [vmem:[%s4263_s2 + $0x254] ss:$8 sps:$4 sm:$0xff]  }
  0x4f   :  { %833 = vmatpush1.bf16.msra.mxu0 %v2861_v42  ;;  %v3014_v42 = vld [vmem:[%s4266_s5 + $0xb0] ss:$8 sps:$4 sm:$0xff]  }
  0x50   :  { %834 = vmatprep.subr.bf16.mxu0 %v2866_v43  ;;  %v3015_v43 = vld [vmem:[%s4266_s5 + $0xc4] ss:$8 sps:$4 sm:$0xff]   ;;  %1204 = vmatpush1.bf16.msra.mxu1 %v3014_v42 }
  0x51   :  { %1205 = vmatprep.subr.bf16.mxu1 %v3015_v43 }
  0x53   :  { %835 = vmatpush1.bf16.msra.mxu0 %v2864_v44  ;;  %v2918_v44 = vld [vmem:[%s4263_s2 + $0x250] ss:$8 sps:$4 sm:$0xff]  }
  0x54   :  { %836 = vmatprep.subr.bf16.mxu0 %v2869_v45  ;;  %v2923_v45 = vld [vmem:[%s4263_s2 + $0x264] ss:$8 sps:$4 sm:$0xff]  }
  0x57   :  { %837 = vmatpush1.bf16.msra.mxu0 %v2867_v46  ;;  %v3017_v46 = vld [vmem:[%s4266_s5 + $0xc0] ss:$8 sps:$4 sm:$0xff]  }
  0x58   :  { %838 = vmatprep.subr.bf16.mxu0 %v2872_v47  ;;  %v2921_v47 = vld [vmem:[%s4263_s2 + $0x260] ss:$8 sps:$4 sm:$0xff]   ;;  %1206 = vmatpush1.bf16.msra.mxu1 %v3017_v46 }
  0x5b   :  { %839 = vmatpush1.bf16.msra.mxu0 %v2870_v48  ;;  %v2926_v48 = vld [vmem:[%s4263_s2 + $0x274] ss:$8 sps:$4 sm:$0xff]  }
  0x5c   :  { %840 = vmatprep.subr.bf16.mxu0 %v2875_v49  ;;  %v2924_v49 = vld [vmem:[%s4263_s2 + $0x270] ss:$8 sps:$4 sm:$0xff]  }
  0x5f   :  { %841 = vmatpush1.bf16.msra.mxu0 %v2873_v50  ;;  %v2929_v50 = vld [vmem:[%s4263_s2 + $0x284] ss:$8 sps:$4 sm:$0xff]  }
  0x60   :  { %842 = vmatprep.subr.bf16.mxu0 %v2878_v51  ;;  %v2927_v51 = vld [vmem:[%s4263_s2 + $0x280] ss:$8 sps:$4 sm:$0xff]  }
  0x63   :  { %843 = vmatpush1.bf16.msra.mxu0 %v2876_v52  ;;  %v2932_v52 = vld [vmem:[%s4263_s2 + $0x294] ss:$8 sps:$4 sm:$0xff]  }
  0x64   :  { %844 = vmatprep.subr.bf16.mxu0 %v2881_v53  ;;  %v2930_v53 = vld [vmem:[%s4263_s2 + $0x290] ss:$8 sps:$4 sm:$0xff]  }
  0x67   :  { %845 = vmatpush1.bf16.msra.mxu0 %v2879_v55  ;;  %v2935_v55 = vld [vmem:[%s4263_s2 + $0x2a4] ss:$8 sps:$4 sm:$0xff]  }
  0x68   :  { %846 = vmatprep.subr.bf16.mxu0 %v2884_v56  ;;  %v2933_v56 = vld [vmem:[%s4263_s2 + $0x2a0] ss:$8 sps:$4 sm:$0xff]  }
  0x6b   :  { %847 = vmatpush1.bf16.msra.mxu0 %v2882_v62  ;;  %v2942_v62 = vld [vmem:[%s4263_s2 + $0x2d0] ss:$8 sps:$4 sm:$0xff]  }
  0x6c   :  { %848 = vmatprep.subr.bf16.mxu0 %v2887_v0  ;;  %v2945_v0 = vld [vmem:[%s4263_s2 + $0x2e0] ss:$8 sps:$4 sm:$0xff]  }
  0x6f   :  { %849 = vmatpush1.bf16.msra.mxu0 %v2885_v2  ;;  %v2948_v2 = vld [vmem:[%s4263_s2 + $0x2f0] ss:$8 sps:$4 sm:$0xff]  }
  0x70   :  { %850 = vmatprep.subr.bf16.mxu0 %v2890_v4  ;;  %v2951_v4 = vld [vmem:[%s4264_s0 + $0x10] ss:$28 sps:$4 sm:$0xff]  }
  0x73   :  { %851 = vmatpush1.bf16.msra.mxu0 %v2888_v6  ;;  %v2959_v6 = vld [vmem:[%s4263_s2 + $0x314] ss:$8 sps:$4 sm:$0xff]  }
  0x74   :  { %852 = vmatprep.subr.bf16.mxu0 %v2893_v8  ;;  %v2962_v8 = vld [vmem:[%s4263_s2 + $0x324] ss:$8 sps:$4 sm:$0xff]  }
  0x77   :  { %853 = vmatpush1.bf16.msra.mxu0 %v2891_v10  ;;  %v2965_v10 = vld [vmem:[%s4263_s2 + $0x334] ss:$8 sps:$4 sm:$0xff]  }
  0x78   :  { %854 = vmatprep.subr.bf16.mxu0 %v2896_v11  ;;  %v2968_v11 = vld [vmem:[%s4263_s2 + $0x344] ss:$8 sps:$4 sm:$0xff]  }
  0x7b   :  { %855 = vmatpush1.bf16.msra.mxu0 %v2894_v14  ;;  %v2969_v14 = vld [vmem:[%s4263_s2 + $0x350] ss:$8 sps:$4 sm:$0xff]  }
  0x7c   :  { %856 = vmatprep.subr.bf16.mxu0 %v2899_v16  ;;  %v2972_v16 = vld [vmem:[%s4263_s2 + $0x360] ss:$8 sps:$4 sm:$0xff]  }
  0x7f   :  { %857 = vmatpush1.bf16.msra.mxu0 %v2897_v18  ;;  %v2975_v18 = vld [vmem:[%s4263_s2 + $0x370] ss:$8 sps:$4 sm:$0xff]  }
  0x80   :  { %869 = vmatprep.subr.bf16.mxu0 %v2905_v20  ;;  %v3018_v20 = vld [vmem:[%s4266_s5 + $0xd4] ss:$8 sps:$4 sm:$0xff]  }
  0x81   :  { %1207 = vmatprep.subr.bf16.mxu1 %v3018_v20  ;;  %v3065_v20 = vld [vmem:[%s4267_s7 + $0xc4] ss:$8 sps:$4 sm:$0xff]  }
  0x82   :  { %859 = vmatmul.mubr.bf16.vlgmr.msra.gmra.mrb[0].mxu0 %v2900_v22  ;;  %1208 = vmatpush1.bf16.msra.mxu1 %v3020_v21  ;;  %v3021_v22 = vld [vmem:[%s4266_s5 + $0xe4] ss:$8 sps:$4 sm:$0xff]   ;;  %v3063_v21 = vld [vmem:[%s4267_s7 + $0xc0] ss:$8 sps:$4 sm:$0xff]  }
  0x83   :  { %870 = vmatpush1.bf16.msra.mxu0 %v2903_v23  ;;  %901 = vmatprep.mubr.bf16.mxu0 %v2953_v24  ;;  %v3023_v23 = vld [vmem:[%s4266_s5 + $0xe0] ss:$8 sps:$4 sm:$0xff]   ;;  %v3024_v24 = vld [vmem:[%s4266_s5 + $0xf4] ss:$8 sps:$4 sm:$0xff]  }
  0x84   :  { %871 = vmatprep.subr.bf16.mxu0 %v2908_v25  ;;  %1209 = vmatprep.subr.bf16.mxu1 %v3021_v22  ;;  %v3026_v25 = vld [vmem:[%s4266_s5 + $0xf0] ss:$8 sps:$4 sm:$0xff]   ;;  %v3068_v22 = vld [vmem:[%s4267_s7 + $0xd4] ss:$8 sps:$4 sm:$0xff]  }
  0x86   :  { %1210 = vmatpush1.bf16.msra.mxu1 %v3023_v23  ;;  %v3066_v23 = vld [vmem:[%s4267_s7 + $0xd0] ss:$8 sps:$4 sm:$0xff]  }
  0x87   :  { %872 = vmatpush1.bf16.msra.mxu0 %v2906_v28  ;;  %1211 = vmatprep.subr.bf16.mxu1 %v3024_v24  ;;  %v3760_v28 = vshrl.u32 %v173_v27, 7  ;;  %v3071_v24 = vld [vmem:[%s4267_s7 + $0xe4] ss:$8 sps:$4 sm:$0xff]   ;;  %v3072_v27 = vld [vmem:[%s4267_s7 + $0xf0] ss:$8 sps:$4 sm:$0xff]  }
  0x88   :  { %873 = vmatprep.subr.bf16.mxu0 %v2911_v29 }
  0x89   :  { %v3763_v29 = vsub.s32 0, %v3760_v28  ;;  %v3769_v31 = vsub.s32 1, %v3760_v28 }
  0x8a   :  { %1212 = vmatpush1.bf16.msra.mxu1 %v3026_v25  ;;  %v3069_v25 = vld [vmem:[%s4267_s7 + $0xe0] ss:$8 sps:$4 sm:$0xff]  }
  0x8b   :  { %874 = vmatpush1.bf16.msra.mxu0 %v2909_v32  ;;  %1434 = vmatprep.subr.bf16.mxu1 %v3029_v26  ;;  %v180_v34 = vrot.slane %v161_v30, %v3769_v31  ;;  %v960_v38 = vrot.slane %v955_v35, %v3763_v29  ;;  %v3074_v26 = vld [vmem:[%s4267_s7 + $0xf4] ss:$8 sps:$4 sm:$0xff]  }
  0x8c   :  { %875 = vmatprep.subr.bf16.mxu0 %v2914_v33  ;;  %v176_v33 = vrot.slane %v161_v30, %v3763_v29  ;;  %v3077_v30 = vld [vmem:[%s4270_s9 + $0x4] ss:$28 sps:$4 sm:$0xff]  }
  0x8f   :  { %876 = vmatpush1.bf16.msra.mxu0 %v2912_v36 }
  0x90   :  { %877 = vmatprep.subr.bf16.mxu0 %v2917_v37 }
  0x93   :  { %878 = vmatpush1.bf16.msra.mxu0 %v2915_v40 }
  0x94   :  { %879 = vmatprep.subr.bf16.mxu0 %v2920_v41  ;;  %v165_v32 = vpop.permute.xlu0 %164  ;;  %v964_v41 = vrot.slane %v955_v35, %v3769_v31  ;;  %v3086_v35 = vld [vmem:[%s4270_s9 + $0x4c] ss:$28 sps:$4 sm:$0xff]  }
  0x95   :  { %v183_v36 = vmul.f32 %v176_v33, %v165_v32  ;;  %v184_v39 = vmul.f32 %v180_v34, %v165_v32  ;;  %v3078_v32 = vld [vmem:[%s4270_s9 + $0x10] ss:$28 sps:$4 sm:$0xff]  }
  0x97   :  { %880 = vmatpush1.bf16.msra.mxu0 %v2918_v44 }
  0x98   :  { %881 = vmatprep.subr.bf16.mxu0 %v2923_v45  ;;  %v170_v37 = vpop.permute.xlu0 %169 }
  0x99   :  { %v185_v42 = vmul.f32 %v176_v33, %v170_v37  ;;  %v186_v45 = vmul.f32 %v180_v34, %v170_v37  ;;  %v3080_v33 = vld [vmem:[%s4270_s9 + $0x14] ss:$28 sps:$4 sm:$0xff]   ;;  %v3084_v34 = vld [vmem:[%s4270_s9 + $0x48] ss:$28 sps:$4 sm:$0xff]   ;;  %v3090_v37 = vld [vmem:[%s4270_s9 + $0x80] ss:$28 sps:$4 sm:$0xff]  }
  0x9b   :  { %882 = vmatpush1.bf16.msra.mxu0 %v2921_v47 }
  0x9c   :  { %883 = vmatprep.subr.bf16.mxu0 %v2926_v48 }
  0x9f   :  { %884 = vmatpush1.bf16.msra.mxu0 %v2924_v49 }
  0xa0   :  { %885 = vmatprep.subr.bf16.mxu0 %v2929_v50 }
  0xa3   :  { %886 = vmatpush1.bf16.msra.mxu0 %v2927_v51 }
  0xa4   :  { %887 = vmatprep.subr.bf16.mxu0 %v2932_v52 }
  0xa7   :  { %888 = vmatpush1.bf16.msra.mxu0 %v2930_v53 }
  0xa8   :  { %889 = vmatprep.subr.bf16.mxu0 %v2935_v55 }
  0xab   :  { %890 = vmatpush1.bf16.msra.mxu0 %v2933_v56 }
  0xac   :  { %891 = vmatprep.subr.bf16.mxu0 %v2938_v57 }
  0xaf   :  { %892 = vmatpush1.bf16.msra.mxu0 %v2936_v58 }
  0xb0   :  { %893 = vmatprep.subr.bf16.mxu0 %v2941_v59 }
  0xb3   :  { %894 = vmatpush1.bf16.msra.mxu0 %v2939_v60 }
  0xb4   :  { %895 = vmatprep.subr.bf16.mxu0 %v2944_v61 }
  0xb7   :  { %896 = vmatpush1.bf16.msra.mxu0 %v2942_v62  ;;  %v3027_v62 = vld [vmem:[%s4267_s7] ss:$8 sps:$4 sm:$0xff]  }
  0xb8   :  { %897 = vmatprep.subr.bf16.mxu0 %v2947_v63  ;;  %v3032_v63 = vld [vmem:[%s4267_s7 + $0x14] ss:$8 sps:$4 sm:$0xff]  }
  0xbb   :  { %898 = vmatpush1.bf16.msra.mxu0 %v2945_v0  ;;  %v3030_v0 = vld [vmem:[%s4267_s7 + $0x10] ss:$8 sps:$4 sm:$0xff]  }
  0xbc   :  { %899 = vmatprep.subr.bf16.mxu0 %v2950_v1  ;;  %v3035_v1 = vld [vmem:[%s4267_s7 + $0x24] ss:$8 sps:$4 sm:$0xff]  }
  0xbf   :  { %900 = vmatpush1.bf16.msra.mxu0 %v2948_v2  ;;  %v3033_v2 = vld [vmem:[%s4267_s7 + $0x20] ss:$8 sps:$4 sm:$0xff]  }
  0xc0   :  { %912 = vmatprep.subr.bf16.mxu0 %v2956_v3  ;;  %v3038_v3 = vld [vmem:[%s4267_s7 + $0x34] ss:$8 sps:$4 sm:$0xff]  }
  0xc2   :  { %902 = vmatmul.mubr.bf16.vlgmr.msra.gmra.mrb[0].mxu0 %v2951_v4  ;;  %v3036_v4 = vld [vmem:[%s4267_s7 + $0x30] ss:$8 sps:$4 sm:$0xff]  }
  0xc3   :  { %913 = vmatpush1.bf16.msra.mxu0 %v2954_v5  ;;  %944 = vmatprep.mubr.bf16.mxu0 %v3235_v54  ;;  %v2963_v54 = vld [vmem:[%s4263_s2 + $0x330] ss:$8 sps:$4 sm:$0xff]   ;;  %v3041_v5 = vld [vmem:[%s4267_s7 + $0x44] ss:$8 sps:$4 sm:$0xff]  }
  0xc4   :  { %914 = vmatprep.subr.bf16.mxu0 %v2959_v6  ;;  %v3039_v6 = vld [vmem:[%s4267_s7 + $0x40] ss:$8 sps:$4 sm:$0xff]  }
  0xc7   :  { %915 = vmatpush1.bf16.msra.mxu0 %v2957_v7  ;;  %v3044_v7 = vld [vmem:[%s4267_s7 + $0x54] ss:$8 sps:$4 sm:$0xff]  }
  0xc8   :  { %916 = vmatprep.subr.bf16.mxu0 %v2962_v8  ;;  %v3042_v8 = vld [vmem:[%s4267_s7 + $0x50] ss:$8 sps:$4 sm:$0xff]  }
  0xcb   :  { %917 = vmatpush1.bf16.msra.mxu0 %v2960_v9  ;;  %v3047_v9 = vld [vmem:[%s4267_s7 + $0x64] ss:$8 sps:$4 sm:$0xff]  }
  0xcc   :  { %918 = vmatprep.subr.bf16.mxu0 %v2965_v10  ;;  %v3045_v10 = vld [vmem:[%s4267_s7 + $0x60] ss:$8 sps:$4 sm:$0xff]  }
  0xcf   :  { %919 = vmatpush1.bf16.msra.mxu0 %v2963_v54  ;;  %v3050_v54 = vld [vmem:[%s4267_s7 + $0x74] ss:$8 sps:$4 sm:$0xff]  }
  0xd0   :  { %920 = vmatprep.subr.bf16.mxu0 %v2968_v11  ;;  %v3048_v11 = vld [vmem:[%s4267_s7 + $0x70] ss:$8 sps:$4 sm:$0xff]  }
  0xd3   :  { %921 = vmatpush1.bf16.msra.mxu0 %v2966_v12  ;;  %v3053_v12 = vld [vmem:[%s4267_s7 + $0x84] ss:$8 sps:$4 sm:$0xff]  }
  0xd4   :  { %922 = vmatprep.subr.bf16.mxu0 %v2971_v13  ;;  %v3051_v13 = vld [vmem:[%s4267_s7 + $0x80] ss:$8 sps:$4 sm:$0xff]  }
  0xd7   :  { %923 = vmatpush1.bf16.msra.mxu0 %v2969_v14  ;;  %v3056_v14 = vld [vmem:[%s4267_s7 + $0x94] ss:$8 sps:$4 sm:$0xff]  }
  0xd8   :  { %924 = vmatprep.subr.bf16.mxu0 %v2974_v15  ;;  %v3054_v15 = vld [vmem:[%s4267_s7 + $0x90] ss:$8 sps:$4 sm:$0xff]  }
  0xdb   :  { %925 = vmatpush1.bf16.msra.mxu0 %v2972_v16  ;;  %v3059_v16 = vld [vmem:[%s4267_s7 + $0xa4] ss:$8 sps:$4 sm:$0xff]  }
  0xdc   :  { %926 = vmatprep.subr.bf16.mxu0 %v2977_v17  ;;  %v3057_v17 = vld [vmem:[%s4267_s7 + $0xa0] ss:$8 sps:$4 sm:$0xff]  }
  0xdf   :  { %927 = vmatpush1.bf16.msra.mxu0 %v2975_v18  ;;  %v3062_v18 = vld [vmem:[%s4267_s7 + $0xb4] ss:$8 sps:$4 sm:$0xff]  }
  0xe0   :  { %2310 = vmatprep.subr.bf16.mxu0 %v3080_v33  ;;  %v3131_v33 = vld [vmem:[%s4270_s9 + $0x1fc] ss:$28 sps:$4 sm:$0xff]  }
  0xe2   :  { %945 = vmatmul.mubr.bf16.vlgmr.msra.gmra.mrb[0].mxu0 %v2978_v19  ;;  %v3060_v19 = vld [vmem:[%s4267_s7 + $0xb0] ss:$8 sps:$4 sm:$0xff]  }
  0xe3   :  { %2311 = vmatpush1.bf16.msra.mxu0 %v3078_v32  ;;  %v3123_v32 = vld [vmem:[%s4270_s9 + $0x1c0] ss:$28 sps:$4 sm:$0xff]  }
  0xe4   :  { %2312 = vmatprep.subr.bf16.mxu0 %v3086_v35  ;;  %v3137_v35 = vld [vmem:[%s4270_s9 + $0x234] ss:$28 sps:$4 sm:$0xff]  }
  0xe7   :  { %2313 = vmatpush1.bf16.msra.mxu0 %v3084_v34  ;;  %v3129_v34 = vld [vmem:[%s4270_s9 + $0x1f8] ss:$28 sps:$4 sm:$0xff]  }
 0x1b5   :  { %v946_v40 = vpop.f32.mrb[0].mxu0 }
 0x1b6   :  { %v2783_v43 = vadd.f32 %v946_v40, %v183_v36  ;;  %v948_v44 = vpop.f32.mrb[1].mxu0  ;;  %v3092_v36 = vld [vmem:[%s4270_s9 + $0x84] ss:$28 sps:$4 sm:$0xff]   ;;  %v3104_v40 = vld [vmem:[%s4270_s9 + $0xf4] ss:$28 sps:$4 sm:$0xff]  }
 0x1b7   :  { %v2784_v46 = vadd.f32 %v948_v44, %v184_v39  ;;  %v950_v47 = vpop.f32.mrb[2].mxu0  ;;  %2314 = vmatprep.subr.bf16.mxu0 %v3092_v36  ;;  %v3096_v39 = vld [vmem:[%s4270_s9 + $0xb8] ss:$28 sps:$4 sm:$0xff]   ;;  %v3116_v44 = vld [vmem:[%s4270_s9 + $0x164] ss:$28 sps:$4 sm:$0xff]  }
 0x1b8   :  { %v967_v48 = vadd.f32 %v2783_v43, %v960_v38  ;;  %v2785_v49 = vadd.f32 %v950_v47, %v185_v42  ;;  %v952_v50 = vpop.f32.mrb[3].mxu0  ;;  %2315 = vmatpush1.bf16.msra.mxu0 %v3090_v37  ;;  %v3110_v42 = vld [vmem:[%s4270_s9 + $0x12c] ss:$28 sps:$4 sm:$0xff]   ;;  %v3120_v47 = vld [vmem:[%s4270_s9 + $0x198] ss:$28 sps:$4 sm:$0xff]  }
 0x1b9   :  { %v2786_v51 = vadd.f32 %v952_v50, %v186_v45  ;;  %v968_v52 = vadd.f32 %v2784_v46, %v964_v41  ;;  %v3108_v43 = vld [vmem:[%s4270_s9 + $0x128] ss:$28 sps:$4 sm:$0xff]   ;;  %v3114_v45 = vld [vmem:[%s4270_s9 + $0x160] ss:$28 sps:$4 sm:$0xff]   ;;  %v3135_v36 = vld [vmem:[%s4270_s9 + $0x230] ss:$28 sps:$4 sm:$0xff]  }
 0x1ba   :  { %v969_v53 = vadd.f32 %v2785_v49, %v960_v38  ;;  %v971_v56 = vmax.f32 %v967_v48, 0.0  ;;  %v3098_v38 = vld [vmem:[%s4270_s9 + $0xbc] ss:$28 sps:$4 sm:$0xff]   ;;  %v3128_v48 = vld [vmem:[%s4270_s9 + $0x1d4] ss:$28 sps:$4 sm:$0xff]  }
 0x1bb   :  { %v970_v55 = vadd.f32 %v2786_v51, %v964_v41  ;;  %v972_v58 = vmax.f32 %v968_v52, 0.0  ;;  %2316 = vmatprep.subr.bf16.mxu0 %v3098_v38  ;;  %v3102_v41 = vld [vmem:[%s4270_s9 + $0xf0] ss:$28 sps:$4 sm:$0xff]   ;;  %v3122_v46 = vld [vmem:[%s4270_s9 + $0x19c] ss:$28 sps:$4 sm:$0xff]  }
 0x1bc   :  { %v973_v57 = vmax.f32 %v969_v53, 0.0  ;;  %2317 = vmatpush1.bf16.msra.mxu0 %v3096_v39  ;;  %v3126_v49 = vld [vmem:[%s4270_s9 + $0x1d0] ss:$28 sps:$4 sm:$0xff]   ;;  %v3132_v51 = vld [vmem:[%s4270_s9 + $0x208] ss:$28 sps:$4 sm:$0xff]  }
 0x1bd   :  { %v974_v59 = vmax.f32 %v970_v55, 0.0  ;;  %2318 = vmatprep.subr.bf16.mxu0 %v3104_v40  ;;  %v3134_v50 = vld [vmem:[%s4270_s9 + $0x20c] ss:$28 sps:$4 sm:$0xff]   ;;  %v3140_v52 = vld [vmem:[%s4270_s9 + $0x244] ss:$28 sps:$4 sm:$0xff]  }
 0x1be   :  { %v975_v60 = vpack.c.bf16 %v973_v57, %v971_v56  ;;  %v3138_v53 = vld [vmem:[%s4270_s9 + $0x240] ss:$28 sps:$4 sm:$0xff]   ;;  %v3144_v56 = vld [vmem:[%s4270_s9 + $0x278] ss:$28 sps:$4 sm:$0xff]   ;;  %v3143_v37 = vld [vmem:[%s4270_s9 + $0x26c] ss:$28 sps:$4 sm:$0xff]  }
 0x1bf   :  { %v976_v61 = vpack.c.bf16 %v974_v59, %v972_v58  ;;  %v3146_v55 = vld [vmem:[%s4270_s9 + $0x27c] ss:$28 sps:$4 sm:$0xff]   ;;  %v3152_v57 = vld [vmem:[%s4270_s9 + $0x2b4] ss:$28 sps:$4 sm:$0xff]   ;;  %v3158_v59 = vld [vmem:[%s4270_s9 + $0x2ec] ss:$28 sps:$4 sm:$0xff]  }
 0x1c0   :  { %2319 = vmatpush1.bf16.msra.mxu0 %v3102_v41  ;;  %v3150_v58 = vld [vmem:[%s4270_s9 + $0x2b0] ss:$28 sps:$4 sm:$0xff]   ;;  %v3141_v38 = vld [vmem:[%s4270_s9 + $0x268] ss:$28 sps:$4 sm:$0xff]   ;;  %v3147_v40 = vld [vmem:[%s4270_s9 + $0x2a0] ss:$28 sps:$4 sm:$0xff]  }
 0x1c1   :  { %1213 = vmatprep.mubr.bf16.mxu1 %v976_v61  ;;  %2320 = vmatprep.subr.bf16.mxu0 %v3110_v42  ;;  %v1009_v61 = vld [vmem:[%s4271_s6] sm:$0x3]  ;;  %v3155_v41 = vld [vmem:[%s4270_s9 + $0x2dc] ss:$28 sps:$4 sm:$0xff]  }
 0x1c2   :  { %1214 = vmatmul.mubr.bf16.vlgmr.msra.gmra.mrb[0].mxu1 %v975_v60  ;;  %v3156_v60 = vld [vmem:[%s4270_s9 + $0x2e8] ss:$28 sps:$4 sm:$0xff]   ;;  %v3153_v42 = vld [vmem:[%s4270_s9 + $0x2d8] ss:$28 sps:$4 sm:$0xff]  }
 0x1c3   :  { %1435 = vmatpush1.bf16.msra.mxu1 %v3027_v62  ;;  %v1014_v62 = vrot.slane %v1009_v61, %v3763_v29  ;;  %v3149_v39 = vld [vmem:[%s4270_s9 + $0x2a4] ss:$28 sps:$4 sm:$0xff]  }
 0x1c4   :  { %1436 = vmatprep.subr.bf16.mxu1 %v3032_v63  ;;  %2321 = vmatpush1.bf16.msra.mxu0 %v3108_v43  ;;  %v1018_v63 = vrot.slane %v1009_v61, %v3769_v31  ;;  %v3161_v43 = vld [vmem:[%s4270_s9 + $0x314] ss:$28 sps:$4 sm:$0xff]  }
 0x1c5   :  { %2322 = vmatprep.subr.bf16.mxu0 %v3116_v44  ;;  %v3159_v44 = vld [vmem:[%s4270_s9 + $0x310] ss:$28 sps:$4 sm:$0xff]  }
 0x1c7   :  { %1437 = vmatpush1.bf16.msra.mxu1 %v3030_v0 }
 0x1c8   :  { %1438 = vmatprep.subr.bf16.mxu1 %v3035_v1  ;;  %2323 = vmatpush1.bf16.msra.mxu0 %v3114_v45  ;;  %v3164_v45 = vld [vmem:[%s4270_s9 + $0x324] ss:$28 sps:$4 sm:$0xff]  }
 0x1c9   :  { %2324 = vmatprep.subr.bf16.mxu0 %v3122_v46  ;;  %v3162_v46 = vld [vmem:[%s4270_s9 + $0x320] ss:$28 sps:$4 sm:$0xff]  }
 0x1cb   :  { %1439 = vmatpush1.bf16.msra.mxu1 %v3033_v2 }
 0x1cc   :  { %1440 = vmatprep.subr.bf16.mxu1 %v3038_v3  ;;  %2325 = vmatpush1.bf16.msra.mxu0 %v3120_v47  ;;  %v3167_v47 = vld [vmem:[%s4270_s9 + $0x34c] ss:$28 sps:$4 sm:$0xff]  }
 0x1cd   :  { %2326 = vmatprep.subr.bf16.mxu0 %v3128_v48  ;;  %v3165_v48 = vld [vmem:[%s4270_s9 + $0x348] ss:$28 sps:$4 sm:$0xff]  }
 0x1cf   :  { %1441 = vmatpush1.bf16.msra.mxu1 %v3036_v4 }
 0x1d0   :  { %1442 = vmatprep.subr.bf16.mxu1 %v3041_v5  ;;  %2327 = vmatpush1.bf16.msra.mxu0 %v3126_v49  ;;  %v3170_v49 = vld [vmem:[%s4270_s9 + $0x35c] ss:$28 sps:$4 sm:$0xff]  }
 0x1d1   :  { %2328 = vmatprep.subr.bf16.mxu0 %v3134_v50  ;;  %v3168_v50 = vld [vmem:[%s4270_s9 + $0x358] ss:$28 sps:$4 sm:$0xff]  }
 0x1d3   :  { %1443 = vmatpush1.bf16.msra.mxu1 %v3039_v6 }
 0x1d4   :  { %1444 = vmatprep.subr.bf16.mxu1 %v3044_v7  ;;  %2329 = vmatpush1.bf16.msra.mxu0 %v3132_v51  ;;  %v3173_v51 = vld [vmem:[%s4270_s9 + $0xc] ss:$28 sps:$4 sm:$0xff]  }
 0x1d5   :  { %2330 = vmatprep.subr.bf16.mxu0 %v3140_v52  ;;  %v1262_v52 = vld [vmem:[%s4272_s8] sm:$0x3] }
 0x1d7   :  { %1445 = vmatpush1.bf16.msra.mxu1 %v3042_v8 }
 0x1d8   :  { %1446 = vmatprep.subr.bf16.mxu1 %v3047_v9  ;;  %2331 = vmatpush1.bf16.msra.mxu0 %v3138_v53  ;;  %v1267_v53 = vrot.slane %v1262_v52, %v3763_v29 }
 0x1d9   :  { %2332 = vmatprep.subr.bf16.mxu0 %v3146_v55  ;;  %v1271_v55 = vrot.slane %v1262_v52, %v3769_v31  ;;  %v3232_v52 = vld [vmem:[%s4270_s9 + $0x168] ss:$28 sps:$4 sm:$0xff]  }
 0x1db   :  { %1447 = vmatpush1.bf16.msra.mxu1 %v3045_v10 }
 0x1dc   :  { %1448 = vmatprep.subr.bf16.mxu1 %v3050_v54  ;;  %2333 = vmatpush1.bf16.msra.mxu0 %v3144_v56 }
 0x1dd   :  { %2334 = vmatprep.subr.bf16.mxu0 %v3152_v57 }
 0x1df   :  { %1449 = vmatpush1.bf16.msra.mxu1 %v3048_v11 }
 0x1e0   :  { %1450 = vmatprep.subr.bf16.mxu1 %v3053_v12  ;;  %2335 = vmatpush1.bf16.msra.mxu0 %v3150_v58 }
 0x1e1   :  { %2336 = vmatprep.subr.bf16.mxu0 %v3158_v59 }
 0x1e3   :  { %1451 = vmatpush1.bf16.msra.mxu1 %v3051_v13  ;;  %v3075_v13 = vld [vmem:[%s4270_s9] ss:$28 sps:$4 sm:$0xff]  }
 0x1e4   :  { %1452 = vmatprep.subr.bf16.mxu1 %v3056_v14  ;;  %2337 = vmatpush1.bf16.msra.mxu0 %v3156_v60  ;;  %v3083_v14 = vld [vmem:[%s4270_s9 + $0x3c] ss:$28 sps:$4 sm:$0xff]  }
 0x1e5   :  { %2338 = vmatprep.subr.bf16.mxu0 %v3164_v45  ;;  %v3225_v45 = vld [vmem:[%s4270_s9 + $0x280] ss:$28 sps:$4 sm:$0xff]  }
 0x1e7   :  { %1453 = vmatpush1.bf16.msra.mxu1 %v3054_v15  ;;  %v3081_v15 = vld [vmem:[%s4270_s9 + $0x38] ss:$28 sps:$4 sm:$0xff]  }
 0x1e8   :  { %1454 = vmatprep.subr.bf16.mxu1 %v3059_v16  ;;  %v3089_v16 = vld [vmem:[%s4270_s9 + $0x74] ss:$28 sps:$4 sm:$0xff]   ;;  %2339 = vmatpush1.bf16.msra.mxu0 %v3162_v46  ;;  %v3226_v46 = vld [vmem:[%s4270_s9 + $0xc0] ss:$28 sps:$4 sm:$0xff]  }
 0x1e9   :  { %2340 = vmatprep.subr.bf16.mxu0 %v3170_v49  ;;  %v3229_v49 = vld [vmem:[%s4270_s9 + $0x2f0] ss:$28 sps:$4 sm:$0xff]  }
 0x1eb   :  { %1455 = vmatpush1.bf16.msra.mxu1 %v3057_v17  ;;  %v3087_v17 = vld [vmem:[%s4270_s9 + $0x70] ss:$28 sps:$4 sm:$0xff]  }
 0x1ec   :  { %1456 = vmatprep.subr.bf16.mxu1 %v3062_v18  ;;  %v3095_v18 = vld [vmem:[%s4270_s9 + $0xac] ss:$28 sps:$4 sm:$0xff]   ;;  %2341 = vmatpush1.bf16.msra.mxu0 %v3168_v50 }
 0x1ed   :  { %v3230_v50 = vld [vmem:[%s4270_s9 + $0x130] ss:$28 sps:$4 sm:$0xff]  }
 0x1ef   :  { %1457 = vmatpush1.bf16.msra.mxu1 %v3060_v19  ;;  %v3093_v19 = vld [vmem:[%s4270_s9 + $0xa8] ss:$28 sps:$4 sm:$0xff]  }
 0x1f0   :  { %1458 = vmatprep.subr.bf16.mxu1 %v3065_v20  ;;  %v3101_v20 = vld [vmem:[%s4270_s9 + $0xe4] ss:$28 sps:$4 sm:$0xff]  }
 0x1f3   :  { %1459 = vmatpush1.bf16.msra.mxu1 %v3063_v21  ;;  %v3099_v21 = vld [vmem:[%s4270_s9 + $0xe0] ss:$28 sps:$4 sm:$0xff]  }
 0x1f4   :  { %1460 = vmatprep.subr.bf16.mxu1 %v3068_v22  ;;  %v3107_v22 = vld [vmem:[%s4270_s9 + $0x11c] ss:$28 sps:$4 sm:$0xff]  }
 0x1f7   :  { %1461 = vmatpush1.bf16.msra.mxu1 %v3066_v23  ;;  %v3105_v23 = vld [vmem:[%s4270_s9 + $0x118] ss:$28 sps:$4 sm:$0xff]  }
 0x1f8   :  { %1462 = vmatprep.subr.bf16.mxu1 %v3071_v24  ;;  %v3113_v24 = vld [vmem:[%s4270_s9 + $0x154] ss:$28 sps:$4 sm:$0xff]  }
 0x1fb   :  { %1463 = vmatpush1.bf16.msra.mxu1 %v3069_v25  ;;  %v3111_v25 = vld [vmem:[%s4270_s9 + $0x150] ss:$28 sps:$4 sm:$0xff]  }
 0x1fc   :  { %1464 = vmatprep.subr.bf16.mxu1 %v3074_v26  ;;  %v3119_v26 = vld [vmem:[%s4270_s9 + $0x18c] ss:$28 sps:$4 sm:$0xff]  }
 0x1ff   :  { %1465 = vmatpush1.bf16.msra.mxu1 %v3072_v27  ;;  %v3117_v27 = vld [vmem:[%s4270_s9 + $0x188] ss:$28 sps:$4 sm:$0xff]  }
 0x200   :  { %2224 = vmatprep.subr.bf16.mxu1 %v3077_v30  ;;  %v3125_v30 = vld [vmem:[%s4270_s9 + $0x1c4] ss:$28 sps:$4 sm:$0xff]  }
 0x295   :  { %v1215_v0 = vpop.f32.mrb[0].mxu1 }
 0x296   :  { %v1216_v1 = vadd.f32 %v1215_v0, %v1014_v62  ;;  %v1217_v2 = vpop.f32.mrb[1].mxu1 }
 0x297   :  { %v1218_v3 = vadd.f32 %v1217_v2, %v1018_v63  ;;  %v1219_v4 = vpop.f32.mrb[2].mxu1 }
 0x298   :  { %v1220_v5 = vadd.f32 %v1219_v4, %v1014_v62  ;;  %v1221_v6 = vpop.f32.mrb[3].mxu1  ;;  %v1224_v8 = vmax.f32 %v1216_v1, 0.0 }
 0x299   :  { %v1222_v7 = vadd.f32 %v1221_v6, %v1018_v63  ;;  %v1225_v10 = vmax.f32 %v1218_v3, 0.0  ;;  %v3171_v6 = vld [vmem:[%s4270_s9 + $0x8] ss:$28 sps:$4 sm:$0xff]  }
 0x29a   :  { %v1226_v9 = vmax.f32 %v1220_v5, 0.0 }
 0x29b   :  { %v1227_v54 = vmax.f32 %v1222_v7, 0.0  ;;  %v3176_v7 = vld [vmem:[%s4270_s9 + $0x44] ss:$28 sps:$4 sm:$0xff]  }
 0x29c   :  { %v1228_v11 = vpack.c.bf16 %v1226_v9, %v1224_v8  ;;  %v3174_v8 = vld [vmem:[%s4270_s9 + $0x40] ss:$28 sps:$4 sm:$0xff]  }
 0x29d   :  { %v1229_v12 = vpack.c.bf16 %v1227_v54, %v1225_v10  ;;  %v3179_v9 = vld [vmem:[%s4270_s9 + $0x7c] ss:$28 sps:$4 sm:$0xff]   ;;  %v3182_v54 = vld [vmem:[%s4270_s9 + $0xb4] ss:$28 sps:$4 sm:$0xff]  }
 0x29e   :  { %v3177_v10 = vld [vmem:[%s4270_s9 + $0x78] ss:$28 sps:$4 sm:$0xff]  }
 0x29f   :  { %1466 = vmatprep.mubr.bf16.mxu1 %v1229_v12  ;;  %v3185_v12 = vld [vmem:[%s4270_s9 + $0xec] ss:$28 sps:$4 sm:$0xff]  }
 0x2a0   :  { %1467 = vmatmul.mubr.bf16.vlgmr.msra.gmra.mrb[4].mxu1 %v1228_v11  ;;  %v3180_v11 = vld [vmem:[%s4270_s9 + $0xb0] ss:$28 sps:$4 sm:$0xff]  }
 0x2a1   :  { %2225 = vmatpush1.bf16.msra.mxu1 %v3075_v13  ;;  %v3183_v13 = vld [vmem:[%s4270_s9 + $0xe8] ss:$28 sps:$4 sm:$0xff]  }
 0x2a2   :  { %2226 = vmatprep.subr.bf16.mxu1 %v3083_v14  ;;  %v3188_v14 = vld [vmem:[%s4270_s9 + $0x124] ss:$28 sps:$4 sm:$0xff]  }
 0x2a5   :  { %2227 = vmatpush1.bf16.msra.mxu1 %v3081_v15  ;;  %v3186_v15 = vld [vmem:[%s4270_s9 + $0x120] ss:$28 sps:$4 sm:$0xff]  }
 0x2a6   :  { %2228 = vmatprep.subr.bf16.mxu1 %v3089_v16  ;;  %v3191_v16 = vld [vmem:[%s4270_s9 + $0x15c] ss:$28 sps:$4 sm:$0xff]  }
 0x2a9   :  { %2229 = vmatpush1.bf16.msra.mxu1 %v3087_v17  ;;  %v3189_v17 = vld [vmem:[%s4270_s9 + $0x158] ss:$28 sps:$4 sm:$0xff]  }
 0x2aa   :  { %2230 = vmatprep.subr.bf16.mxu1 %v3095_v18  ;;  %v3194_v18 = vld [vmem:[%s4270_s9 + $0x194] ss:$28 sps:$4 sm:$0xff]  }
 0x2ad   :  { %2231 = vmatpush1.bf16.msra.mxu1 %v3093_v19  ;;  %v3192_v19 = vld [vmem:[%s4270_s9 + $0x190] ss:$28 sps:$4 sm:$0xff]  }
 0x2ae   :  { %2232 = vmatprep.subr.bf16.mxu1 %v3101_v20  ;;  %v3197_v20 = vld [vmem:[%s4270_s9 + $0x1cc] ss:$28 sps:$4 sm:$0xff]  }
 0x2b1   :  { %2233 = vmatpush1.bf16.msra.mxu1 %v3099_v21  ;;  %v3195_v21 = vld [vmem:[%s4270_s9 + $0x1c8] ss:$28 sps:$4 sm:$0xff]  }
 0x2b2   :  { %2234 = vmatprep.subr.bf16.mxu1 %v3107_v22  ;;  %v3200_v22 = vld [vmem:[%s4270_s9 + $0x204] ss:$28 sps:$4 sm:$0xff]  }
 0x2b5   :  { %2235 = vmatpush1.bf16.msra.mxu1 %v3105_v23  ;;  %v3198_v23 = vld [vmem:[%s4270_s9 + $0x200] ss:$28 sps:$4 sm:$0xff]  }
 0x2b6   :  { %2236 = vmatprep.subr.bf16.mxu1 %v3113_v24  ;;  %v3203_v24 = vld [vmem:[%s4270_s9 + $0x23c] ss:$28 sps:$4 sm:$0xff]  }
 0x2b9   :  { %2237 = vmatpush1.bf16.msra.mxu1 %v3111_v25  ;;  %v3201_v25 = vld [vmem:[%s4270_s9 + $0x238] ss:$28 sps:$4 sm:$0xff]  }
 0x2ba   :  { %2238 = vmatprep.subr.bf16.mxu1 %v3119_v26  ;;  %v3206_v26 = vld [vmem:[%s4270_s9 + $0x274] ss:$28 sps:$4 sm:$0xff]  }
 0x2bd   :  { %2239 = vmatpush1.bf16.msra.mxu1 %v3117_v27  ;;  %v3204_v27 = vld [vmem:[%s4270_s9 + $0x270] ss:$28 sps:$4 sm:$0xff]  }
 0x2be   :  { %2240 = vmatprep.subr.bf16.mxu1 %v3125_v30  ;;  %v3209_v30 = vld [vmem:[%s4270_s9 + $0x2ac] ss:$28 sps:$4 sm:$0xff]  }
 0x2c1   :  { %2241 = vmatpush1.bf16.msra.mxu1 %v3123_v32  ;;  %v3207_v32 = vld [vmem:[%s4270_s9 + $0x2a8] ss:$28 sps:$4 sm:$0xff]  }
 0x2c2   :  { %2242 = vmatprep.subr.bf16.mxu1 %v3131_v33  ;;  %v3212_v33 = vld [vmem:[%s4270_s9 + $0x2e4] ss:$28 sps:$4 sm:$0xff]  }
 0x2c5   :  { %2243 = vmatpush1.bf16.msra.mxu1 %v3129_v34  ;;  %v3210_v34 = vld [vmem:[%s4270_s9 + $0x2e0] ss:$28 sps:$4 sm:$0xff]  }
 0x2c6   :  { %2244 = vmatprep.subr.bf16.mxu1 %v3137_v35  ;;  %v3215_v35 = vld [vmem:[%s4270_s9 + $0x31c] ss:$28 sps:$4 sm:$0xff]  }
 0x2c9   :  { %2245 = vmatpush1.bf16.msra.mxu1 %v3135_v36  ;;  %v3213_v36 = vld [vmem:[%s4270_s9 + $0x318] ss:$28 sps:$4 sm:$0xff]  }
 0x2ca   :  { %2246 = vmatprep.subr.bf16.mxu1 %v3143_v37  ;;  %v3218_v37 = vld [vmem:[%s4270_s9 + $0x354] ss:$28 sps:$4 sm:$0xff]  }
 0x2cd   :  { %2247 = vmatpush1.bf16.msra.mxu1 %v3141_v38  ;;  %v3216_v38 = vld [vmem:[%s4270_s9 + $0x350] ss:$28 sps:$4 sm:$0xff]  }
 0x2ce   :  { %2248 = vmatprep.subr.bf16.mxu1 %v3149_v39  ;;  %v3219_v39 = vld [vmem:[%s4270_s9 + $0x1d8] ss:$28 sps:$4 sm:$0xff]  }
 0x2d1   :  { %2249 = vmatpush1.bf16.msra.mxu1 %v3147_v40  ;;  %v3220_v40 = vld [vmem:[%s4270_s9 + $0x18] ss:$28 sps:$4 sm:$0xff]  }
 0x2d2   :  { %2250 = vmatprep.subr.bf16.mxu1 %v3155_v41  ;;  %v3221_v41 = vld [vmem:[%s4270_s9 + $0x210] ss:$28 sps:$4 sm:$0xff]  }
 0x2d5   :  { %2251 = vmatpush1.bf16.msra.mxu1 %v3153_v42  ;;  %v3222_v42 = vld [vmem:[%s4270_s9 + $0x50] ss:$28 sps:$4 sm:$0xff]  }
 0x2d6   :  { %2252 = vmatprep.subr.bf16.mxu1 %v3161_v43  ;;  %v3223_v43 = vld [vmem:[%s4270_s9 + $0x248] ss:$28 sps:$4 sm:$0xff]  }
 0x2d9   :  { %2253 = vmatpush1.bf16.msra.mxu1 %v3159_v44  ;;  %v3224_v44 = vld [vmem:[%s4270_s9 + $0x88] ss:$28 sps:$4 sm:$0xff]  }
 0x2da   :  { %2254 = vmatprep.subr.bf16.mxu1 %v3167_v47  ;;  %v3227_v47 = vld [vmem:[%s4270_s9 + $0x2b8] ss:$28 sps:$4 sm:$0xff]  }
 0x2dd   :  { %2255 = vmatpush1.bf16.msra.mxu1 %v3165_v48  ;;  %v3228_v48 = vld [vmem:[%s4270_s9 + $0xf8] ss:$28 sps:$4 sm:$0xff]  }
 0x2de   :  { %2267 = vmatprep.subr.bf16.mxu1 %v3173_v51  ;;  %v3231_v51 = vld [vmem:[%s4270_s9 + $0x328] ss:$28 sps:$4 sm:$0xff]  }
 0x373   :  { %v1468_v56 = vpop.f32.mrb[4].mxu1 }
 0x374   :  { %v1469_v57 = vadd.f32 %v1468_v56, %v1267_v53  ;;  %v1470_v58 = vpop.f32.mrb[5].mxu1  ;;  %v1631_v56 = vsub.s32 4, %v3760_v28 }
 0x375   :  { %v1471_v59 = vadd.f32 %v1470_v58, %v1271_v55  ;;  %v1472_v60 = vpop.f32.mrb[6].mxu1  ;;  %v1635_v58 = vsub.s32 5, %v3760_v28 }
 0x376   :  { %v1473_v61 = vadd.f32 %v1472_v60, %v1267_v53  ;;  %v1474_v62 = vpop.f32.mrb[7].mxu1  ;;  %v1477_v0 = vmax.f32 %v1469_v57, 0.0  ;;  %v3233_v53 = vld [vmem:[%s4270_s9 + $0x360] ss:$28 sps:$4 sm:$0xff]  }
 0x377   :  { %v1475_v63 = vadd.f32 %v1474_v62, %v1271_v55  ;;  %v1478_v2 = vmax.f32 %v1471_v59, 0.0  ;;  %v3234_v55 = vld [vmem:[%s4270_s9 + $0x1a0] ss:$28 sps:$4 sm:$0xff]  }
 0x378   :  { %v1479_v1 = vmax.f32 %v1473_v61, 0.0  ;;  %v1611_v57 = vld [vmem:[%s4273_s10] sm:$0xff] }
 0x379   :  { %v1480_v3 = vmax.f32 %v1475_v63, 0.0  ;;  %v1616_v59 = vrot.slane %v1611_v57, %v3763_v29  ;;  %v1632_v60 = vrot.slane %v1611_v57, %v1631_v56  ;;  %v1620_v61 = vrot.slane %v1611_v57, %v3769_v31 }
 0x37a   :  { %v4076_v4 = vpack.c.bf16 %v1479_v1, %v1477_v0  ;;  %v1636_v62 = vrot.slane %v1611_v57, %v1635_v58 }
 0x37b   :  { %v4078_v5 = vpack.c.bf16 %v1480_v3, %v1478_v2 }
 0x37d   :  { %2256 = vmatprep.mubr.bf16.mxu1 %v4078_v5  ;;  %2342 = vmatprep.mubr.bf16.mxu0 %v4078_v5 }
 0x37e   :  { %2257 = vmatmul.mubr.bf16.vlgmr.msra.gmra.mrb[8].mxu1 %v4076_v4  ;;  %2343 = vmatmul.mubr.bf16.vlgmr.msra.gmra.mrb[4].mxu0 %v4076_v4 }
 0x37f   :  { %2268 = vmatpush1.bf16.msra.mxu1 %v3171_v6  ;;  %2299 = vmatprep.mubr.bf16.mxu1 %v4078_v5 }
 0x380   :  { %2269 = vmatprep.subr.bf16.mxu1 %v3176_v7 }
 0x383   :  { %2270 = vmatpush1.bf16.msra.mxu1 %v3174_v8 }
 0x384   :  { %2271 = vmatprep.subr.bf16.mxu1 %v3179_v9 }
 0x387   :  { %2272 = vmatpush1.bf16.msra.mxu1 %v3177_v10 }
 0x388   :  { %2273 = vmatprep.subr.bf16.mxu1 %v3182_v54 }
 0x38b   :  { %2274 = vmatpush1.bf16.msra.mxu1 %v3180_v11 }
 0x38c   :  { %2275 = vmatprep.subr.bf16.mxu1 %v3185_v12 }
 0x38f   :  { %2276 = vmatpush1.bf16.msra.mxu1 %v3183_v13 }
 0x390   :  { %2277 = vmatprep.subr.bf16.mxu1 %v3188_v14 }
 0x393   :  { %2278 = vmatpush1.bf16.msra.mxu1 %v3186_v15 }
 0x394   :  { %2279 = vmatprep.subr.bf16.mxu1 %v3191_v16  ;;  %v1623_v16 = vsub.s32 2, %v3760_v28 }
 0x397   :  { %2280 = vmatpush1.bf16.msra.mxu1 %v3189_v17  ;;  %v1627_v17 = vsub.s32 3, %v3760_v28 }
 0x398   :  { %2281 = vmatprep.subr.bf16.mxu1 %v3194_v18  ;;  %v1624_v18 = vrot.slane %v1611_v57, %v1623_v16 }
 0x39b   :  { %2282 = vmatpush1.bf16.msra.mxu1 %v3192_v19  ;;  %v1628_v19 = vrot.slane %v1611_v57, %v1627_v17 }
 0x39c   :  { %2283 = vmatprep.subr.bf16.mxu1 %v3197_v20 }
 0x39f   :  { %2284 = vmatpush1.bf16.msra.mxu1 %v3195_v21 }
 0x3a0   :  { %2285 = vmatprep.subr.bf16.mxu1 %v3200_v22 }
 0x3a3   :  { %2286 = vmatpush1.bf16.msra.mxu1 %v3198_v23 }
 0x3a4   :  { %2287 = vmatprep.subr.bf16.mxu1 %v3203_v24 }
 0x3a7   :  { %2288 = vmatpush1.bf16.msra.mxu1 %v3201_v25 }
 0x3a8   :  { %2289 = vmatprep.subr.bf16.mxu1 %v3206_v26 }
 0x3ab   :  { %2290 = vmatpush1.bf16.msra.mxu1 %v3204_v27 }
 0x3ac   :  { %2291 = vmatprep.subr.bf16.mxu1 %v3209_v30 }
 0x3af   :  { %2292 = vmatpush1.bf16.msra.mxu1 %v3207_v32 }
 0x3b0   :  { %2293 = vmatprep.subr.bf16.mxu1 %v3212_v33  ;;  %v1639_v33 = vsub.s32 6, %v3760_v28 }
 0x3b3   :  { %2294 = vmatpush1.bf16.msra.mxu1 %v3210_v34 }
 0x3b4   :  { %2295 = vmatprep.subr.bf16.mxu1 %v3215_v35  ;;  %v1640_v35 = vrot.slane %v1611_v57, %v1639_v33 }
 0x3b7   :  { %2296 = vmatpush1.bf16.msra.mxu1 %v3213_v36 }
 0x3b8   :  { %2297 = vmatprep.subr.bf16.mxu1 %v3218_v37 }
 0x3bb   :  { %2298 = vmatpush1.bf16.msra.mxu1 %v3216_v38 }
 0x3bc   :  { %2761 = vmatprep.subr.bf16.mxu1 %v3219_v39 }
 0x3be   :  { %2300 = vmatmul.mubr.bf16.vlgmr.msra.gmra.mrb[12].mxu1 %v4076_v4 }
 0x3bf   :  { %2762 = vmatpush3.bf16.msra.mxu1 %v3220_v40  ;;  %2385 = vmatprep.mubr.bf16.mxu1 %v4078_v5 }
 0x3c0   :  { %2763 = vmatprep.subr.bf16.mxu1 %v3221_v41 }
 0x3c3   :  { %2764 = vmatpush3.bf16.msra.mxu1 %v3222_v42 }
 0x3c4   :  { %2765 = vmatprep.subr.bf16.mxu1 %v3223_v43 }
 0x3c7   :  { %2766 = vmatpush3.bf16.msra.mxu1 %v3224_v44 }
 0x3c8   :  { %2767 = vmatprep.subr.bf16.mxu1 %v3225_v45 }
 0x3cb   :  { %2768 = vmatpush3.bf16.msra.mxu1 %v3226_v46 }
 0x3cc   :  { %2769 = vmatprep.subr.bf16.mxu1 %v3227_v47 }
 0x3cf   :  { %2770 = vmatpush3.bf16.msra.mxu1 %v3228_v48 }
 0x3d0   :  { %2771 = vmatprep.subr.bf16.mxu1 %v3229_v49 }
 0x3d3   :  { %2772 = vmatpush3.bf16.msra.mxu1 %v3230_v50 }
 0x3d4   :  { %2773 = vmatprep.subr.bf16.mxu1 %v3231_v51 }
 0x3d7   :  { %2774 = vmatpush3.bf16.msra.mxu1 %v3232_v52 }
 0x3d8   :  { %2775 = vmatprep.subr.bf16.mxu1 %v3233_v53 }
 0x3db   :  { %2776 = vmatpush3.bf16.msra.mxu1 %v3234_v55 }
 0x3de   :  { %2386 = vmatmul.mubr.bf16.vlgmr.msra.gmra.mrb[16].mxu1 %v4076_v4 }
 0x451   :  { %v2258_v63 = vpop.f32.mrb[8].mxu1  ;;  %v2344_v0 = vpop.f32.mrb[4].mxu0 }
 0x452   :  { %v2259_v1 = vadd.f32 %v2258_v63, %v1616_v59  ;;  %v2345_v2 = vadd.f32 %v2344_v0, %v1632_v60  ;;  %v2260_v3 = vpop.f32.mrb[9].mxu1  ;;  %v2346_v4 = vpop.f32.mrb[5].mxu0 }
 0x453   :  { %v2261_v5 = vadd.f32 %v2260_v3, %v1620_v61  ;;  %v2347_v6 = vadd.f32 %v2346_v4, %v1636_v62  ;;  %v2262_v7 = vpop.f32.mrb[10].mxu1  ;;  %v2348_v8 = vpop.f32.mrb[6].mxu0 }
 0x454   :  { %v2263_v9 = vadd.f32 %v2262_v7, %v1616_v59  ;;  %v2349_v10 = vadd.f32 %v2348_v8, %v1632_v60  ;;  %v2264_v54 = vpop.f32.mrb[11].mxu1  ;;  %v2350_v11 = vpop.f32.mrb[7].mxu0 }
 0x455   :  { %v2753_v12 = vpack.c.bf16 %v2261_v5, %v2259_v1  ;;  %v2755_v29 = vpack.c.bf16 %v2347_v6, %v2345_v2  ;;  %v2265_v13 = vadd.f32 %v2264_v54, %v1620_v61  ;;  %v2351_v14 = vadd.f32 %v2350_v11, %v1636_v62 }
 0x457   :  { %2438 = vst [vmem:[%s4274_s11] sm:$0xff] %v2753_v12  ;;  %2440 = vst [vmem:[%s4274_s11 + $0x10] sm:$0xff] %v2755_v29  ;;  %v2757_v31 = vpack.c.bf16 %v2265_v13, %v2263_v9  ;;  %v2759_v15 = vpack.c.bf16 %v2351_v14, %v2349_v10 }
 0x459   :  { %2442 = vst [vmem:[%s4274_s11 + $0x1c] sm:$0xff] %v2757_v31  ;;  %2444 = vst [vmem:[%s4274_s11 + $0x2c] sm:$0xff] %v2759_v15 }
 0x491   :  { %v2301_v20 = vpop.f32.mrb[12].mxu1 }
 0x492   :  { %v2302_v21 = vadd.f32 %v2301_v20, %v1624_v18  ;;  %v2303_v22 = vpop.f32.mrb[13].mxu1 }
 0x493   :  { %v2304_v23 = vadd.f32 %v2303_v22, %v1628_v19  ;;  %v2305_v24 = vpop.f32.mrb[14].mxu1 }
 0x494   :  { %v2306_v25 = vadd.f32 %v2305_v24, %v1624_v18  ;;  %v2307_v26 = vpop.f32.mrb[15].mxu1 }
 0x495   :  { %v2754_v27 = vpack.c.bf16 %v2304_v23, %v2302_v21  ;;  %v2308_v30 = vadd.f32 %v2307_v26, %v1628_v19 }
 0x497   :  { %2439 = vst [vmem:[%s4274_s11 + $0x8] sm:$0xff] %v2754_v27  ;;  %v2758_v32 = vpack.c.bf16 %v2308_v30, %v2306_v25 }
 0x499   :  { %2443 = vst [vmem:[%s4274_s11 + $0x24] sm:$0xff] %v2758_v32 }
 0x4b1   :  { %v2777_v34 = vpop.f32.mrb[16].mxu1 }
 0x4b2   :  { %v2778_v36 = vpop.f32.mrb[17].mxu1 }
 0x4b3   :  { %v2779_v37 = vadd.f32 %v2778_v36, %v2777_v34  ;;  %v2780_v38 = vpop.f32.mrb[18].mxu1 }
 0x4b4   :  { %v2781_v39 = vpop.f32.mrb[19].mxu1 }
 0x4b5   :  { %v2388_v40 = vadd.f32 %v2779_v37, %v1640_v35  ;;  %v2782_v41 = vadd.f32 %v2781_v39, %v2780_v38 }
 0x4b7   :  { %v2756_v42 = vpack.c.bf16 %v2388_v40, %v2388_v40  ;;  %v2391_v43 = vadd.f32 %v2782_v41, %v1640_v35 }
 0x4b9   :  { %2441 = vst [vmem:[%s4274_s11 + $0x18] sm:$0xf] %v2756_v42  ;;  %v2760_v44 = vpack.c.bf16 %v2391_v43, %v2391_v43 }
 0x4bb   :  { %2445 = vst [vmem:[%s4274_s11 + $0x34] sm:$0xf] %v2760_v44 }

</bundles_post_ra>
